<compile_context>
chip_gen: v7x
topology: tpu7x:2x2x1
jax: 0.10.0
libtpu: 0.0.40
codegen_flags: <defaults>
</compile_context>

<pallas_src>
import functools

import numpy as np
import jax
import jax.numpy as jnp
from jax import lax
from jax.experimental import pallas as pl
from jax.experimental.pallas import tpu as pltpu


def _erf(x):
    # Abramowitz & Stegun 7.1.26, |err| <= 1.5e-7 (effectively exact at f32 here).
    a1, a2, a3, a4, a5 = 0.254829592, -0.284496736, 1.421413741, -1.453152027, 1.061405429
    p = 0.3275911
    ax = jnp.abs(x)
    t = 1.0 / (1.0 + p * ax)
    poly = ((((a5 * t + a4) * t + a3) * t + a2) * t + a1) * t
    y = 1.0 - poly * jnp.exp(-ax * ax)
    return jnp.where(x >= 0, y, -y)


def _gelu_exact(x):
    # PyTorch F.gelu default: x * 0.5 * (1 + erf(x / sqrt(2)))
    return 0.5 * x * (1.0 + _erf(x * 0.7071067811865476))


def _ffn_conv_kernel(x_ref, w_in_ref, b_in_ref, w_dw_ref, b_dw_ref,
                     w_out_ref, b_out_ref, o_ref, buf_ref, *, H, W, hidden):
    HW = H * W
    PAD = W + 1                       # covers tap offsets in [-(W+1), W+1]

    # ---- project_in: 1x1 conv == channel matmul over the flattened spatial axis ----
    t = jnp.dot(w_in_ref[...], x_ref[0],
                preferred_element_type=jnp.float32) + b_in_ref[...]       # (2h, HW) f32

    # ---- 3x3 depthwise conv (stride 1, padding 1) via shifted reads of a
    # ---- zero-padded VMEM slab + per-channel VPU FMAs ----
    nch = buf_ref.shape[0]
    buf_ref[:, :PAD] = jnp.zeros((nch, PAD), jnp.float32)
    buf_ref[:, PAD + HW:] = jnp.zeros((nch, PAD), jnp.float32)
    buf_ref[:, PAD:PAD + HW] = t

    col = lax.broadcasted_iota(jnp.int32, (1, HW), 1) % W
    not_left_edge = col >= 1          # reading column j-1 is valid
    not_right_edge = col <= W - 2     # reading column j+1 is valid

    wdw = w_dw_ref[...]                                                   # (2h, 9)
    acc = b_dw_ref[...] + jnp.zeros((nch, HW), jnp.float32)
    k = 0
    for dy in (-1, 0, 1):
        for dx in (-1, 0, 1):
            off = dy * W + dx
            win = buf_ref[:, PAD + off:PAD + off + HW]     # t[:, p+off], zero-filled halo
            if dx == -1:
                win = jnp.where(not_left_edge, win, 0.0)
            elif dx == 1:
                win = jnp.where(not_right_edge, win, 0.0)
            acc = acc + wdw[:, k:k + 1] * win
            k += 1

    # ---- gate: GELU(x1) * x2 ----
    gate = _gelu_exact(acc[:hidden]) * acc[hidden:]                        # (h, HW)

    # ---- project_out: 1x1 conv ----
    out = jnp.dot(w_out_ref[...], gate,
                  preferred_element_type=jnp.float32) + b_out_ref[...]     # (dim, HW)
    o_ref[0] = out.astype(o_ref.dtype)


def feedforward_conv(x, w_in, b_in, w_dw, b_dw, w_out, b_out):
    """Fused Pallas TPU forward pass of FeedForward_conv.

    x:     (B, dim, H, W)
    w_in:  (2*hidden, dim)      b_in:  (2*hidden, 1)
    w_dw:  (2*hidden, 9)        b_dw:  (2*hidden, 1)   (3x3 taps, row-major ky*3+kx)
    w_out: (dim, hidden)        b_out: (dim, 1)
    (pass zero biases for the bias=False configuration)
    """
    B, C, H, W = x.shape
    HW = H * W
    h2 = w_in.shape[0]
    hidden = h2 // 2
    dim_out = w_out.shape[0]

    x_flat = x.reshape(B, C, HW)          # contiguous -> free reshape, lane-dense input

    kernel = functools.partial(_ffn_conv_kernel, H=H, W=W, hidden=hidden)

    out = pl.pallas_call(
        kernel,
        out_shape=jax.ShapeDtypeStruct((B, dim_out, HW), x.dtype),
        grid_spec=pltpu.PrefetchScalarGridSpec(
            num_scalar_prefetch=0,
            grid=(B,),
            in_specs=[
                pl.BlockSpec((1, C, HW), lambda b: (b, 0, 0)),
                pl.BlockSpec((h2, C), lambda b: (0, 0)),
                pl.BlockSpec((h2, 1), lambda b: (0, 0)),
                pl.BlockSpec((h2, 9), lambda b: (0, 0)),
                pl.BlockSpec((h2, 1), lambda b: (0, 0)),
                pl.BlockSpec((dim_out, hidden), lambda b: (0, 0)),
                pl.BlockSpec((dim_out, 1), lambda b: (0, 0)),
            ],
            out_specs=pl.BlockSpec((1, dim_out, HW), lambda b: (b, 0, 0)),
            scratch_shapes=[pltpu.VMEM((h2, HW + 2 * (W + 1)), jnp.float32)],
        ),
        compiler_params=pltpu.CompilerParams(
            dimension_semantics=("parallel",),
        ),
    )(x_flat, w_in, b_in, w_dw, b_dw, w_out, b_out)

    return out.reshape(B, dim_out, H, W)


def _reference(x, w_in, b_in, w_dw, b_dw, w_out, b_out):
    """Pure-JAX reference mirroring the PyTorch module exactly."""
    h2 = w_in.shape[0]
    hidden = h2 // 2
    dn = ("NCHW", "OIHW", "NCHW")
    y = lax.conv_general_dilated(x, w_in[:, :, None, None], (1, 1), "VALID",
                                 dimension_numbers=dn)
    y = y + b_in.reshape(1, -1, 1, 1)
    y = lax.conv_general_dilated(y, w_dw.reshape(h2, 1, 3, 3), (1, 1),
                                 ((1, 1), (1, 1)), dimension_numbers=dn,
                                 feature_group_count=h2)
    y = y + b_dw.reshape(1, -1, 1, 1)
    x1, x2 = y[:, :hidden], y[:, hidden:]
    g = jax.nn.gelu(x1, approximate=False) * x2
    out = lax.conv_general_dilated(g, w_out[:, :, None, None], (1, 1), "VALID",
                                   dimension_numbers=dn)
    return out + b_out.reshape(1, -1, 1, 1)


if __name__ == "__main__":
    key = jax.random.PRNGKey(0)
    B, dim, H, W = 2, 8, 16, 16
    ffn_expansion_factor = 2.0
    hidden = int(dim * ffn_expansion_factor)      # 16
    h2 = 2 * hidden                               # 32

    ks = jax.random.split(key, 7)
    x = jax.random.normal(ks[0], (B, dim, H, W), dtype=jnp.float32)
    w_in = jax.random.normal(ks[1], (h2, dim), jnp.float32) / np.sqrt(dim)
    b_in = jax.random.normal(ks[2], (h2, 1), jnp.float32) * 0.1
    w_dw = jax.random.normal(ks[3], (h2, 9), jnp.float32) / 3.0
    b_dw = jax.random.normal(ks[4], (h2, 1), jnp.float32) * 0.1
    w_out = jax.random.normal(ks[5], (dim, hidden), jnp.float32) / np.sqrt(hidden)
    b_out = jax.random.normal(ks[6], (dim, 1), jnp.float32) * 0.1

    fn = jax.jit(feedforward_conv)
    y = fn(x, w_in, b_in, w_dw, b_dw, w_out, b_out)
    jax.block_until_ready(y)

    y_ref = _reference(x, w_in, b_in, w_dw, b_dw, w_out, b_out)
    assert y.shape == (B, dim, H, W), y.shape
    np.testing.assert_allclose(np.asarray(y), np.asarray(y_ref), atol=1e-4, rtol=1e-4)

    print("KERNEL_OK")
</pallas_src>

<mosaic_0001>
module attributes {stable_mosaic.version = 11 : i64} {
  func.func @_ffn_conv_kernel(%arg0: i32, %arg1: memref<1x8x256xf32, #tpu.memory_space<vmem>>, %arg2: memref<32x8xf32, #tpu.memory_space<vmem>>, %arg3: memref<32x1xf32, #tpu.memory_space<vmem>>, %arg4: memref<32x9xf32, #tpu.memory_space<vmem>>, %arg5: memref<32x1xf32, #tpu.memory_space<vmem>>, %arg6: memref<8x16xf32, #tpu.memory_space<vmem>>, %arg7: memref<8x1xf32, #tpu.memory_space<vmem>>, %arg8: memref<1x8x256xf32, #tpu.memory_space<vmem>>, %arg9: memref<32x290xf32, #tpu.memory_space<vmem>>) attributes {dimension_semantics = [#tpu.dimension_semantics<parallel>], iteration_bounds = array<i64: 2>, scalar_prefetch = 0 : i64, scratch_operands = 1 : i64, tpu.core_type = #tpu.core_type<tc>, window_params = [{transform_indices = @transform_0, window_bounds = array<i64: 1, 8, 256>}, {pipeline_mode = #tpu.pipeline_mode<synchronous>, transform_indices = @transform_1, window_bounds = array<i64: 32, 8>}, {pipeline_mode = #tpu.pipeline_mode<synchronous>, transform_indices = @transform_2, window_bounds = array<i64: 32, 1>}, {pipeline_mode = #tpu.pipeline_mode<synchronous>, transform_indices = @transform_3, window_bounds = array<i64: 32, 9>}, {pipeline_mode = #tpu.pipeline_mode<synchronous>, transform_indices = @transform_4, window_bounds = array<i64: 32, 1>}, {pipeline_mode = #tpu.pipeline_mode<synchronous>, transform_indices = @transform_5, window_bounds = array<i64: 8, 16>}, {pipeline_mode = #tpu.pipeline_mode<synchronous>, transform_indices = @transform_6, window_bounds = array<i64: 8, 1>}, {transform_indices = @transform_7, window_bounds = array<i64: 1, 8, 256>}]} {
    %c0 = arith.constant 0 : index
    %c0_0 = arith.constant 0 : index
    %0 = vector.load %arg2[%c0, %c0_0] : memref<32x8xf32, #tpu.memory_space<vmem>>, vector<32x8xf32>
    %c0_1 = arith.constant 0 : index
    %c0_2 = arith.constant 0 : index
    %c0_3 = arith.constant 0 : index
    %1 = vector.load %arg1[%c0_1, %c0_2, %c0_3] : memref<1x8x256xf32, #tpu.memory_space<vmem>>, vector<1x8x256xf32>
    %2 = vector.shape_cast %1 : vector<1x8x256xf32> to vector<8x256xf32>
    %cst = arith.constant dense<0.000000e+00> : vector<32x256xf32>
    %3 = tpu.matmul %0, %2, %cst {dimension_numbers = #tpu.dot_dimension_numbers<[1], [0], [0], [1], [0, 0, 1, 1], [], []>} : vector<32x8xf32>, vector<8x256xf32>, vector<32x256xf32> -> vector<32x256xf32>
    %c0_4 = arith.constant 0 : index
    %c0_5 = arith.constant 0 : index
    %4 = vector.load %arg3[%c0_4, %c0_5] : memref<32x1xf32, #tpu.memory_space<vmem>>, vector<32x1xf32>
    %5 = vector.broadcast %4 : vector<32x1xf32> to vector<32x256xf32>
    %6 = arith.addf %3, %5 : vector<32x256xf32>
    %cst_6 = arith.constant 0.000000e+00 : f32
    %7 = vector.broadcast %cst_6 : f32 to vector<32x17xf32>
    %c0_7 = arith.constant 0 : index
    %c0_8 = arith.constant 0 : index
    %8 = vector.load %arg9[%c0_7, %c0_8] : memref<32x290xf32, #tpu.memory_space<vmem>>, vector<32x17xf32>
    tpu.vector_store %arg9[%c0_7, %c0_8], %7 {strides = array<i32>} : memref<32x290xf32, #tpu.memory_space<vmem>>, vector<32x17xf32>,
    %cst_9 = arith.constant 0.000000e+00 : f32
    %9 = vector.broadcast %cst_9 : f32 to vector<32x17xf32>
    %c0_10 = arith.constant 0 : index
    %c273 = arith.constant 273 : index
    %10 = vector.load %arg9[%c0_10, %c273] : memref<32x290xf32, #tpu.memory_space<vmem>>, vector<32x17xf32>
    tpu.vector_store %arg9[%c0_10, %c273], %9 {strides = array<i32>} : memref<32x290xf32, #tpu.memory_space<vmem>>, vector<32x17xf32>,
    %c0_11 = arith.constant 0 : index
    %c17 = arith.constant 17 : index
    %11 = vector.load %arg9[%c0_11, %c17] : memref<32x290xf32, #tpu.memory_space<vmem>>, vector<32x256xf32>
    tpu.vector_store %arg9[%c0_11, %c17], %6 {strides = array<i32>} : memref<32x290xf32, #tpu.memory_space<vmem>>, vector<32x256xf32>,
    %12 = tpu.iota {dimensions = array<i32: 1>} : vector<1x256xi32>
    %c16_i32 = arith.constant 16 : i32
    %c0_i32 = arith.constant 0 : i32
    %13 = arith.cmpi eq, %c16_i32, %c0_i32 : i32
    %c1_i32 = arith.constant 1 : i32
    %14 = arith.select %13, %c1_i32, %c16_i32 : i32
    %15 = vector.broadcast %14 : i32 to vector<1x256xi32>
    %16 = arith.remsi %12, %15 : vector<1x256xi32>
    %c0_i32_12 = arith.constant 0 : i32
    %17 = vector.broadcast %c0_i32_12 : i32 to vector<1x256xi32>
    %18 = arith.cmpi ne, %16, %17 : vector<1x256xi32>
    %c0_i32_13 = arith.constant 0 : i32
    %19 = vector.broadcast %c0_i32_13 : i32 to vector<1x256xi32>
    %20 = arith.cmpi slt, %16, %19 : vector<1x256xi32>
    %c0_i32_14 = arith.constant 0 : i32
    %21 = arith.cmpi slt, %14, %c0_i32_14 : i32
    %22 = vector.broadcast %21 : i1 to vector<1x256xi1>
    %23 = vector.broadcast %22 : vector<1x256xi1> to vector<1x256xi1>
    %24 = arith.xori %20, %23 : vector<1x256xi1>
    %25 = arith.andi %24, %18 : vector<1x256xi1>
    %26 = vector.broadcast %14 : i32 to vector<1x256xi32>
    %27 = arith.addi %16, %26 : vector<1x256xi32>
    %28 = arith.select %25, %27, %16 : vector<1x256xi1>, vector<1x256xi32>
    %c1_i32_15 = arith.constant 1 : i32
    %29 = vector.broadcast %c1_i32_15 : i32 to vector<1x256xi32>
    %30 = arith.cmpi sge, %28, %29 : vector<1x256xi32>
    %c14_i32 = arith.constant 14 : i32
    %31 = vector.broadcast %c14_i32 : i32 to vector<1x256xi32>
    %32 = arith.cmpi sle, %28, %31 : vector<1x256xi32>
    %c0_16 = arith.constant 0 : index
    %c0_17 = arith.constant 0 : index
    %33 = vector.load %arg4[%c0_16, %c0_17] : memref<32x9xf32, #tpu.memory_space<vmem>>, vector<32x9xf32>
    %c0_18 = arith.constant 0 : index
    %c0_19 = arith.constant 0 : index
    %34 = vector.load %arg5[%c0_18, %c0_19] : memref<32x1xf32, #tpu.memory_space<vmem>>, vector<32x1xf32>
    %cst_20 = arith.constant 0.000000e+00 : f32
    %35 = vector.broadcast %cst_20 : f32 to vector<32x256xf32>
    %36 = vector.broadcast %34 : vector<32x1xf32> to vector<32x256xf32>
    %37 = arith.addf %36, %35 : vector<32x256xf32>
    %c0_21 = arith.constant 0 : index
    %c0_22 = arith.constant 0 : index
    %38 = vector.load %arg9[%c0_21, %c0_22] : memref<32x290xf32, #tpu.memory_space<vmem>>, vector<32x256xf32>
    %cst_23 = arith.constant 0.000000e+00 : f32
    %39 = vector.shape_cast %30 : vector<1x256xi1> to vector<1x256xi1>
    %40 = vector.broadcast %39 : vector<1x256xi1> to vector<32x256xi1>
    %41 = vector.broadcast %cst_23 : f32 to vector<32x256xf32>
    %42 = arith.select %40, %38, %41 : vector<32x256xi1>, vector<32x256xf32>
    %43 = vector.extract_strided_slice %33 {offsets = [0, 0], sizes = [32, 1], strides = [1, 1]} : vector<32x9xf32> to vector<32x1xf32>
    %44 = vector.broadcast %43 : vector<32x1xf32> to vector<32x256xf32>
    %45 = arith.mulf %44, %42 : vector<32x256xf32>
    %46 = arith.addf %37, %45 : vector<32x256xf32>
    %c0_24 = arith.constant 0 : index
    %c1 = arith.constant 1 : index
    %47 = vector.load %arg9[%c0_24, %c1] : memref<32x290xf32, #tpu.memory_space<vmem>>, vector<32x256xf32>
    %48 = vector.extract_strided_slice %33 {offsets = [0, 1], sizes = [32, 1], strides = [1, 1]} : vector<32x9xf32> to vector<32x1xf32>
    %49 = vector.broadcast %48 : vector<32x1xf32> to vector<32x256xf32>
    %50 = arith.mulf %49, %47 : vector<32x256xf32>
    %51 = arith.addf %46, %50 : vector<32x256xf32>
    %c0_25 = arith.constant 0 : index
    %c2 = arith.constant 2 : index
    %52 = vector.load %arg9[%c0_25, %c2] : memref<32x290xf32, #tpu.memory_space<vmem>>, vector<32x256xf32>
    %cst_26 = arith.constant 0.000000e+00 : f32
    %53 = vector.shape_cast %32 : vector<1x256xi1> to vector<1x256xi1>
    %54 = vector.broadcast %53 : vector<1x256xi1> to vector<32x256xi1>
    %55 = vector.broadcast %cst_26 : f32 to vector<32x256xf32>
    %56 = arith.select %54, %52, %55 : vector<32x256xi1>, vector<32x256xf32>
    %57 = vector.extract_strided_slice %33 {offsets = [0, 2], sizes = [32, 1], strides = [1, 1]} : vector<32x9xf32> to vector<32x1xf32>
    %58 = vector.broadcast %57 : vector<32x1xf32> to vector<32x256xf32>
    %59 = arith.mulf %58, %56 : vector<32x256xf32>
    %60 = arith.addf %51, %59 : vector<32x256xf32>
    %c0_27 = arith.constant 0 : index
    %c16 = arith.constant 16 : index
    %61 = vector.load %arg9[%c0_27, %c16] : memref<32x290xf32, #tpu.memory_space<vmem>>, vector<32x256xf32>
    %cst_28 = arith.constant 0.000000e+00 : f32
    %62 = vector.shape_cast %30 : vector<1x256xi1> to vector<1x256xi1>
    %63 = vector.broadcast %62 : vector<1x256xi1> to vector<32x256xi1>
    %64 = vector.broadcast %cst_28 : f32 to vector<32x256xf32>
    %65 = arith.select %63, %61, %64 : vector<32x256xi1>, vector<32x256xf32>
    %66 = vector.extract_strided_slice %33 {offsets = [0, 3], sizes = [32, 1], strides = [1, 1]} : vector<32x9xf32> to vector<32x1xf32>
    %67 = vector.broadcast %66 : vector<32x1xf32> to vector<32x256xf32>
    %68 = arith.mulf %67, %65 : vector<32x256xf32>
    %69 = arith.addf %60, %68 : vector<32x256xf32>
    %c0_29 = arith.constant 0 : index
    %c17_30 = arith.constant 17 : index
    %70 = vector.load %arg9[%c0_29, %c17_30] : memref<32x290xf32, #tpu.memory_space<vmem>>, vector<32x256xf32>
    %71 = vector.extract_strided_slice %33 {offsets = [0, 4], sizes = [32, 1], strides = [1, 1]} : vector<32x9xf32> to vector<32x1xf32>
    %72 = vector.broadcast %71 : vector<32x1xf32> to vector<32x256xf32>
    %73 = arith.mulf %72, %70 : vector<32x256xf32>
    %74 = arith.addf %69, %73 : vector<32x256xf32>
    %c0_31 = arith.constant 0 : index
    %c18 = arith.constant 18 : index
    %75 = vector.load %arg9[%c0_31, %c18] : memref<32x290xf32, #tpu.memory_space<vmem>>, vector<32x256xf32>
    %cst_32 = arith.constant 0.000000e+00 : f32
    %76 = vector.shape_cast %32 : vector<1x256xi1> to vector<1x256xi1>
    %77 = vector.broadcast %76 : vector<1x256xi1> to vector<32x256xi1>
    %78 = vector.broadcast %cst_32 : f32 to vector<32x256xf32>
    %79 = arith.select %77, %75, %78 : vector<32x256xi1>, vector<32x256xf32>
    %80 = vector.extract_strided_slice %33 {offsets = [0, 5], sizes = [32, 1], strides = [1, 1]} : vector<32x9xf32> to vector<32x1xf32>
    %81 = vector.broadcast %80 : vector<32x1xf32> to vector<32x256xf32>
    %82 = arith.mulf %81, %79 : vector<32x256xf32>
    %83 = arith.addf %74, %82 : vector<32x256xf32>
    %c0_33 = arith.constant 0 : index
    %c32 = arith.constant 32 : index
    %84 = vector.load %arg9[%c0_33, %c32] : memref<32x290xf32, #tpu.memory_space<vmem>>, vector<32x256xf32>
    %cst_34 = arith.constant 0.000000e+00 : f32
    %85 = vector.shape_cast %30 : vector<1x256xi1> to vector<1x256xi1>
    %86 = vector.broadcast %85 : vector<1x256xi1> to vector<32x256xi1>
    %87 = vector.broadcast %cst_34 : f32 to vector<32x256xf32>
    %88 = arith.select %86, %84, %87 : vector<32x256xi1>, vector<32x256xf32>
    %89 = vector.extract_strided_slice %33 {offsets = [0, 6], sizes = [32, 1], strides = [1, 1]} : vector<32x9xf32> to vector<32x1xf32>
    %90 = vector.broadcast %89 : vector<32x1xf32> to vector<32x256xf32>
    %91 = arith.mulf %90, %88 : vector<32x256xf32>
    %92 = arith.addf %83, %91 : vector<32x256xf32>
    %c0_35 = arith.constant 0 : index
    %c33 = arith.constant 33 : index
    %93 = vector.load %arg9[%c0_35, %c33] : memref<32x290xf32, #tpu.memory_space<vmem>>, vector<32x256xf32>
    %94 = vector.extract_strided_slice %33 {offsets = [0, 7], sizes = [32, 1], strides = [1, 1]} : vector<32x9xf32> to vector<32x1xf32>
    %95 = vector.broadcast %94 : vector<32x1xf32> to vector<32x256xf32>
    %96 = arith.mulf %95, %93 : vector<32x256xf32>
    %97 = arith.addf %92, %96 : vector<32x256xf32>
    %c0_36 = arith.constant 0 : index
    %c34 = arith.constant 34 : index
    %98 = vector.load %arg9[%c0_36, %c34] : memref<32x290xf32, #tpu.memory_space<vmem>>, vector<32x256xf32>
    %cst_37 = arith.constant 0.000000e+00 : f32
    %99 = vector.shape_cast %32 : vector<1x256xi1> to vector<1x256xi1>
    %100 = vector.broadcast %99 : vector<1x256xi1> to vector<32x256xi1>
    %101 = vector.broadcast %cst_37 : f32 to vector<32x256xf32>
    %102 = arith.select %100, %98, %101 : vector<32x256xi1>, vector<32x256xf32>
    %103 = vector.extract_strided_slice %33 {offsets = [0, 8], sizes = [32, 1], strides = [1, 1]} : vector<32x9xf32> to vector<32x1xf32>
    %104 = vector.broadcast %103 : vector<32x1xf32> to vector<32x256xf32>
    %105 = arith.mulf %104, %102 : vector<32x256xf32>
    %106 = arith.addf %97, %105 : vector<32x256xf32>
    %107 = vector.extract_strided_slice %106 {offsets = [0, 0], sizes = [16, 256], strides = [1, 1]} : vector<32x256xf32> to vector<16x256xf32>
    %cst_38 = arith.constant 5.000000e-01 : f32
    %108 = vector.broadcast %cst_38 : f32 to vector<16x256xf32>
    %109 = arith.mulf %108, %107 : vector<16x256xf32>
    %cst_39 = arith.constant 0.707106769 : f32
    %110 = vector.broadcast %cst_39 : f32 to vector<16x256xf32>
    %111 = arith.mulf %107, %110 : vector<16x256xf32>
    %112 = math.absf %111 : vector<16x256xf32>
    %cst_40 = arith.constant 0.327591091 : f32
    %113 = vector.broadcast %cst_40 : f32 to vector<16x256xf32>
    %114 = arith.mulf %113, %112 : vector<16x256xf32>
    %cst_41 = arith.constant 1.000000e+00 : f32
    %115 = vector.broadcast %cst_41 : f32 to vector<16x256xf32>
    %116 = arith.addf %115, %114 : vector<16x256xf32>
    %cst_42 = arith.constant 1.000000e+00 : f32
    %117 = vector.broadcast %cst_42 : f32 to vector<16x256xf32>
    %118 = arith.divf %117, %116 : vector<16x256xf32>
    %cst_43 = arith.constant 1.06140542 : f32
    %119 = vector.broadcast %cst_43 : f32 to vector<16x256xf32>
    %120 = arith.mulf %119, %118 : vector<16x256xf32>
    %cst_44 = arith.constant -1.45315206 : f32
    %121 = vector.broadcast %cst_44 : f32 to vector<16x256xf32>
    %122 = arith.addf %120, %121 : vector<16x256xf32>
    %123 = arith.mulf %122, %118 : vector<16x256xf32>
    %cst_45 = arith.constant 1.42141378 : f32
    %124 = vector.broadcast %cst_45 : f32 to vector<16x256xf32>
    %125 = arith.addf %123, %124 : vector<16x256xf32>
    %126 = arith.mulf %125, %118 : vector<16x256xf32>
    %cst_46 = arith.constant -0.284496725 : f32
    %127 = vector.broadcast %cst_46 : f32 to vector<16x256xf32>
    %128 = arith.addf %126, %127 : vector<16x256xf32>
    %129 = arith.mulf %128, %118 : vector<16x256xf32>
    %cst_47 = arith.constant 0.254829586 : f32
    %130 = vector.broadcast %cst_47 : f32 to vector<16x256xf32>
    %131 = arith.addf %129, %130 : vector<16x256xf32>
    %132 = arith.mulf %131, %118 : vector<16x256xf32>
    %cst_48 = arith.constant 0.000000e+00 : f32
    %133 = vector.broadcast %cst_48 : f32 to vector<16x256xf32>
    %134 = arith.subf %133, %112 : vector<16x256xf32>
    %135 = arith.mulf %134, %112 : vector<16x256xf32>
    %136 = math.exp %135 : vector<16x256xf32>
    %137 = arith.mulf %132, %136 : vector<16x256xf32>
    %cst_49 = arith.constant 1.000000e+00 : f32
    %138 = vector.broadcast %cst_49 : f32 to vector<16x256xf32>
    %139 = arith.subf %138, %137 : vector<16x256xf32>
    %cst_50 = arith.constant 0.000000e+00 : f32
    %140 = vector.broadcast %cst_50 : f32 to vector<16x256xf32>
    %141 = arith.cmpf oge, %111, %140 : vector<16x256xf32>
    %cst_51 = arith.constant 0.000000e+00 : f32
    %142 = vector.broadcast %cst_51 : f32 to vector<16x256xf32>
    %143 = arith.subf %142, %139 : vector<16x256xf32>
    %144 = arith.select %141, %139, %143 : vector<16x256xi1>, vector<16x256xf32>
    %cst_52 = arith.constant 1.000000e+00 : f32
    %145 = vector.broadcast %cst_52 : f32 to vector<16x256xf32>
    %146 = arith.addf %145, %144 : vector<16x256xf32>
    %147 = arith.mulf %109, %146 : vector<16x256xf32>
    %148 = vector.extract_strided_slice %106 {offsets = [16, 0], sizes = [16, 256], strides = [1, 1]} : vector<32x256xf32> to vector<16x256xf32>
    %149 = arith.mulf %147, %148 : vector<16x256xf32>
    %c0_53 = arith.constant 0 : index
    %c0_54 = arith.constant 0 : index
    %150 = vector.load %arg6[%c0_53, %c0_54] : memref<8x16xf32, #tpu.memory_space<vmem>>, vector<8x16xf32>
    %cst_55 = arith.constant dense<0.000000e+00> : vector<8x256xf32>
    %151 = tpu.matmul %150, %149, %cst_55 {dimension_numbers = #tpu.dot_dimension_numbers<[1], [0], [0], [1], [0, 0, 1, 1], [], []>} : vector<8x16xf32>, vector<16x256xf32>, vector<8x256xf32> -> vector<8x256xf32>
    %c0_56 = arith.constant 0 : index
    %c0_57 = arith.constant 0 : index
    %152 = vector.load %arg7[%c0_56, %c0_57] : memref<8x1xf32, #tpu.memory_space<vmem>>, vector<8x1xf32>
    %153 = vector.broadcast %152 : vector<8x1xf32> to vector<8x256xf32>
    %154 = arith.addf %151, %153 : vector<8x256xf32>
    %c0_58 = arith.constant 0 : index
    %c0_59 = arith.constant 0 : index
    %c0_60 = arith.constant 0 : index
    %155 = vector.load %arg8[%c0_58, %c0_59, %c0_60] : memref<1x8x256xf32, #tpu.memory_space<vmem>>, vector<1x8x256xf32>
    %156 = vector.shape_cast %155 : vector<1x8x256xf32> to vector<8x256xf32>
    %157 = vector.shape_cast %154 : vector<8x256xf32> to vector<1x8x256xf32>
    tpu.vector_store %arg8[%c0_58, %c0_59, %c0_60], %157 {strides = array<i32>} : memref<1x8x256xf32, #tpu.memory_space<vmem>>, vector<1x8x256xf32>,
    return
  }
  func.func @transform_0(%arg0: i32) -> (i32, i32, i32) {
    %c0_i32 = arith.constant 0 : i32
    %c0_i32_0 = arith.constant 0 : i32
    %c0_i32_1 = arith.constant 0 : i32
    return %arg0, %c0_i32, %c0_i32_0 : i32, i32, i32
  }
  func.func @transform_1(%arg0: i32) -> (i32, i32) {
    %c0_i32 = arith.constant 0 : i32
    %c0_i32_0 = arith.constant 0 : i32
    %c0_i32_1 = arith.constant 0 : i32
    return %c0_i32, %c0_i32_0 : i32, i32
  }
  func.func @transform_2(%arg0: i32) -> (i32, i32) {
    %c0_i32 = arith.constant 0 : i32
    %c0_i32_0 = arith.constant 0 : i32
    %c0_i32_1 = arith.constant 0 : i32
    return %c0_i32, %c0_i32_0 : i32, i32
  }
  func.func @transform_3(%arg0: i32) -> (i32, i32) {
    %c0_i32 = arith.constant 0 : i32
    %c0_i32_0 = arith.constant 0 : i32
    %c0_i32_1 = arith.constant 0 : i32
    return %c0_i32, %c0_i32_0 : i32, i32
  }
  func.func @transform_4(%arg0: i32) -> (i32, i32) {
    %c0_i32 = arith.constant 0 : i32
    %c0_i32_0 = arith.constant 0 : i32
    %c0_i32_1 = arith.constant 0 : i32
    return %c0_i32, %c0_i32_0 : i32, i32
  }
  func.func @transform_5(%arg0: i32) -> (i32, i32) {
    %c0_i32 = arith.constant 0 : i32
    %c0_i32_0 = arith.constant 0 : i32
    %c0_i32_1 = arith.constant 0 : i32
    return %c0_i32, %c0_i32_0 : i32, i32
  }
  func.func @transform_6(%arg0: i32) -> (i32, i32) {
    %c0_i32 = arith.constant 0 : i32
    %c0_i32_0 = arith.constant 0 : i32
    %c0_i32_1 = arith.constant 0 : i32
    return %c0_i32, %c0_i32_0 : i32, i32
  }
  func.func @transform_7(%arg0: i32) -> (i32, i32, i32) {
    %c0_i32 = arith.constant 0 : i32
    %c0_i32_0 = arith.constant 0 : i32
    %c0_i32_1 = arith.constant 0 : i32
    return %arg0, %c0_i32, %c0_i32_0 : i32, i32, i32
  }
}

</mosaic_0001>

<bundles_post_ra>
// kernel: feedforward_conv.1
= control target key start
LH: loop header
LB: loop body
LE: loop exit
PB: predicated region body
PF: predicated region fallthrough
CT: control target
= control target key end

     0   :  { %s1708_s24 = smov 0   ;;  %s2719_s0 = inlined_call_operand.vmem [shape: f32[2,8,256], index: 0, kind: input, shape index: {}]   ;;  %s2720_s1 = inlined_call_operand.vmem [shape: f32[32,8], index: 1, kind: input, shape index: {}]   ;;  %s2721_s2 = inlined_call_operand.vmem [shape: f32[32,1], index: 2, kind: input, shape index: {}]   ;;  %s2722_s3 = inlined_call_operand.vmem [shape: f32[32,9], index: 3, kind: input, shape index: {}]   ;;  %s2723_s4 = inlined_call_operand.vmem [shape: f32[32,1], index: 4, kind: input, shape index: {}]   ;;  %s2724_s5 = inlined_call_operand.vmem [shape: f32[8,16], index: 5, kind: input, shape index: {}]   ;;  %s2725_s6 = inlined_call_operand.vmem [shape: f32[8,1], index: 6, kind: input, shape index: {}]   ;;  %s2726_s7 = inlined_call_operand.vmem [shape: f32[2,8,256], index: 7, kind: output, shape index: {}]  }
   0x1 LB: > { %s1544_s25 = sadd.s32 4294967295, %s1647_s24   ;;  %p1548_p0 = scmp.ge.s32.totalorder %s1647_s24, 1  ;;  %s1647_s24 = sphi %s1708_s24, %s17_s24  }
   0x2   : > { %p237_p1 = scmp.lt.s32.totalorder %s1647_s24, 3 }
   0x4   : > { %p238_p2 = pnand %p1548_p0, %p237_p1 }
   0x6   : > { %241 = sbr.rel (%p238_p2) target bundleno = 901 (0x385), region = 48 }
   0xd   : > { %p269_p3 = scmp.lt.s32.totalorder %s1544_s25, 1  ;;  %v1649_v0 = vmov 0.0   ;;  %v1721_v1 = vld [vmem:[%s2722_s3] sm:$0xff]  ;;  %v1650_v2 = vmov 1   ;;  %v1651_v3 = vmov 0   ;;  %v287_v4 = vld [vmem:[%s2721_s2 + $0x10] sm:$0xff] }
   0xe   : > { %386 = vmatprep.mubr.f32.mxu0 %v1649_v0  ;;  %404 = vmatprep.mubr.f32.mxu1 %v1649_v0  ;;  %v279_v5 = vld [vmem:[%s2720_s1] sm:$0xff]  ;;  %vm309_vm0 = vcmask 64512   ;;  %v282_v8 = vld [vmem:[%s2720_s1 + $0x18] sm:$0xff]  ;;  %v1745_v9 = vld [vmem:[%s2722_s3 + $0x10] sm:$0xff]  ;;  %v1652_v14 = vmov 4   ;;  %v1653_v16 = vmov 7  }
   0xf   : > { %s2789_s25 = smov (!%p269_p3, %s1544_s25), 1  ;;  %1596 = vset.pattern.permute.xlu0 %v1650_v2  ;;  %1595 = vset.pattern.permute.xlu1 %v1651_v3  ;;  %v288_v10 = vld [vmem:[%s2721_s2 + $0x18] sm:$0xff]  ;;  %v280_v11 = vld [vmem:[%s2720_s1 + $0x8] sm:$0xff]  ;;  %v281_v13 = vld [vmem:[%s2720_s1 + $0x10] sm:$0xff]  ;;  %v1654_v17 = vmov 3   ;;  %v1655_v23 = vmov 2  }
  0x10   : > { %606 = vperm.xlu0 %1596, %v1721_v1   ;;  %s1560_s30 = sshll.u32 %s2789_s25, 4  ;;  %301 = vperm.xlu1 %1595, %v287_v4   ;;  %v1761_v12 = vld [vmem:[%s2722_s3 + $0x8] sm:$0xff]  ;;  %v1772_v15 = vld [vmem:[%s2722_s3 + $0x18] sm:$0xff]  ;;  %v285_v18 = vld [vmem:[%s2721_s2] sm:$0xff]  ;;  %v1656_v24 = vmov 5   ;;  %v1657_v25 = vmov 6  }
  0x11   : > { %s273_s10 = scalar_lea.vmem %s2719_s0, %s1560_s30  ;;  %v286_v19 = vld [vmem:[%s2721_s2 + $0x8] sm:$0xff]  ;;  %v509_v20 = vld [vmem:[%s2723_s4] sm:$0xff]  ;;  %v512_v21 = vld [vmem:[%s2723_s4 + $0x18] sm:$0xff]  ;;  %v1658_v26 = vmov 8   ;;  %vm411_vm1 = vcmask 138240   ;;  %vm416_vm2 = vcmask 277640   ;;  %s278_s14 = scalar_lea.vmem %s2726_s7, %s1560_s30 }
  0x12   : > { %v284_v6 = vld [vmem:[%s273_s10 + $0x8] sm:$0xff]  ;;  %v283_v7 = vld [vmem:[%s273_s10] sm:$0xff]  ;;  %v511_v27 = vld [vmem:[%s2723_s4 + $0x10] sm:$0xff]  ;;  %412 = vst.msk [vmem:[#allocation2] sm:$0xff] %vm411_vm1, %v1649_v0  ;;  %s1659_s19 = smov 17   ;;  %vm461_vm3 = vcmask 1047688  }
  0x13   : > { %322 = vmatprep.subr.mxu0 %v284_v6  ;;  %1566 = vmatprep.subr.mxu1 %v284_v6  ;;  %v510_v22 = vld [vmem:[%s2723_s4 + $0x8] sm:$0xff]  ;;  %413 = vst.msk [vmem:[#allocation2 + $0x18] sm:$0xff] %vm411_vm1, %v1649_v0  ;;  %414 = vst.msk [vmem:[#allocation2 + $0x30] sm:$0xff] %vm411_vm1, %v1649_v0  ;;  %s1660_s20 = smov 112   ;;  %s1661_s21 = smov 126   ;;  %vm815_vm4 = vcmask 916480  }
  0x14   : > { %323 = vmatpush1.msra.mxu0 %v283_v7  ;;  %1567 = vmatpush1.msra.mxu1 %v283_v7  ;;  %415 = vst.msk [vmem:[#allocation2 + $0x48] sm:$0xff] %vm411_vm1, %v1649_v0  ;;  %s1662_s22 = smov 96   ;;  %s1663_s23 = smov 110   ;;  %vm734_vm5 = vcmask 1031168   ;;  %vm1066_vm6 = vcmask 785408   ;;  %vm1236_vm7 = vcmask 769024  }
  0x15   : > { %1553 = vmatmul.mubr.msk.f32.vlgmr.msra.gmra.mrb[0].mxu0 %vm309_vm0, %v279_v5  ;;  %1556 = vmatmul.mubr.msk.f32.vlgmr.msra.gmra.mrb[0].mxu1 %vm309_vm0, %v282_v8  ;;  %417 = vst.msk [vmem:[#allocation2 + $0x10] sm:$0xff] %vm416_vm2, %v1649_v0  ;;  %418 = vst.msk [vmem:[#allocation2 + $0x28] sm:$0xff] %vm416_vm2, %v1649_v0  ;;  %s1664_s26 = smov 94   ;;  %s1665_s27 = smov 127   ;;  %vm985_vm8 = vcmask 900096   ;;  %vm669_vm13 = vcmask 1039360  }
  0x16   : > { %392 = vmatprep.mubr.f32.mxu0 %v1649_v0  ;;  %614 = vperm.xlu0 %1596, %v1745_v9   ;;  %419 = vst.msk [vmem:[#allocation2 + $0x40] sm:$0xff] %vm416_vm2, %v1649_v0  ;;  %420 = vst.msk [vmem:[#allocation2 + $0x58] sm:$0xff] %vm416_vm2, %v1649_v0  ;;  %s1666_s28 = smov 95   ;;  %s1667_s29 = smov 111   ;;  %vm936_vm14 = vcmask 908288   ;;  %vm1187_vm15 = vcmask 777216  }
  0x17   : > { %306 = vperm.xlu1 %1595, %v288_v10   ;;  %1480 = vmatprep.mubr.f32.mxu1 %v1649_v0 }
  0x19   : > { %1554 = vmatmul.mubr.msk.f32.gmra.mrb[2].mxu0 %vm309_vm0, %v280_v11 }
  0x1a   : > { %398 = vmatprep.mubr.f32.mxu0 %v1649_v0  ;;  %1600 = vset.pattern.permute.xlu0 %v1652_v14 }
  0x1b   : > { %877 = vperm.xlu0 %1600, %v1761_v12   ;;  %1597 = vset.pattern.permute.xlu1 %v1650_v2 }
  0x1c   : > { %610 = vperm.xlu1 %1597, %v1761_v12  }
  0x1d   : > { %1555 = vmatmul.mubr.msk.f32.gmra.mrb[4].mxu0 %vm309_vm0, %v281_v13 }
  0x1f   : > { %885 = vperm.xlu0 %1600, %v1772_v15  }
  0x20   : > { %1598 = vset.pattern.permute.xlu1 %v1652_v14 }
  0x21   : > { %873 = vperm.xlu1 %1598, %v1721_v1  }
  0x23   : > { %1605 = vset.pattern.permute.xlu0 %v1653_v16 }
  0x24   : > { %1136 = vperm.xlu0 %1605, %v1772_v15  }
  0x25   : > { %1599 = vset.pattern.permute.xlu1 %v1653_v16 }
  0x26   : > { %1124 = vperm.xlu1 %1599, %v1721_v1  }
  0x28   : > { %1607 = vset.pattern.permute.xlu0 %v1654_v17 }
  0x29   : > { %841 = vperm.xlu0 %1607, %v1721_v1  }
  0x2a   : > { %1128 = vperm.xlu1 %1599, %v1761_v12  }
  0x2d   : > { %1608 = vset.pattern.permute.xlu0 %v1651_v3 }
  0x2e   : > { %291 = vperm.xlu0 %1608, %v285_v18   ;;  %1601 = vset.pattern.permute.xlu1 %v1650_v2 }
  0x2f   : > { %618 = vperm.xlu1 %1601, %v1772_v15  }
  0x32   : > { %296 = vperm.xlu0 %1608, %v286_v19  }
  0x33   : > { %1602 = vset.pattern.permute.xlu1 %v1652_v14 }
  0x34   : > { %881 = vperm.xlu1 %1602, %v1745_v9  }
  0x36   : > { %515 = vperm.xlu0 %1608, %v509_v20  }
  0x38   : > { %1603 = vset.pattern.permute.xlu1 %v1651_v3 }
  0x39   : > { %559 = vperm.xlu1 %1603, %v1721_v1  }
  0x3a   : > { %569 = vperm.xlu0 %1608, %v1745_v9  }
  0x3d   : > { %564 = vperm.xlu1 %1603, %v1761_v12  }
  0x3e   : > { %530 = vperm.xlu0 %1608, %v512_v21  }
  0x41   : > { %520 = vperm.xlu1 %1603, %v510_v22  }
  0x42   : > { %1615 = vset.pattern.permute.xlu0 %v1655_v23 }
  0x43   : > { %772 = vperm.xlu0 %1615, %v1772_v15  }
  0x45   : > { %1604 = vset.pattern.permute.xlu1 %v1653_v16 }
  0x46   : > { %1132 = vperm.xlu1 %1604, %v1745_v9  }
  0x47   : > { %1616 = vset.pattern.permute.xlu0 %v1656_v24 }
  0x48   : > { %1015 = vperm.xlu0 %1616, %v1761_v12  }
  0x4a   : > { %1606 = vset.pattern.permute.xlu1 %v1655_v23 }
  0x4b   : > { %760 = vperm.xlu1 %1606, %v1721_v1  }
  0x4c   : > { %1019 = vperm.xlu0 %1616, %v1745_v9  }
  0x4f   : > { %764 = vperm.xlu1 %1606, %v1761_v12  }
  0x50   : > { %1618 = vset.pattern.permute.xlu0 %v1657_v25 }
  0x51   : > { %1092 = vperm.xlu0 %1618, %v1721_v1  }
  0x53   : > { %1609 = vset.pattern.permute.xlu1 %v1654_v17 }
  0x54   : > { %845 = vperm.xlu1 %1609, %v1761_v12  }
  0x55   : > { %1104 = vperm.xlu0 %1618, %v1772_v15  }
  0x58   : > { %1610 = vset.pattern.permute.xlu1 %v1656_v24 }
  0x59   : > { %1011 = vperm.xlu1 %1610, %v1721_v1   ;;  %1621 = vset.pattern.permute.xlu0 %v1658_v26 }
  0x5a   : > { %1266 = vperm.xlu0 %1621, %v1761_v12  }
  0x5d   : > { %1611 = vset.pattern.permute.xlu1 %v1657_v25 }
  0x5e   : > { %1096 = vperm.xlu1 %1611, %v1761_v12   ;;  %1270 = vperm.xlu0 %1621, %v1745_v9  }
  0x62   : > { %1612 = vset.pattern.permute.xlu1 %v1658_v26  ;;  %1624 = vset.pattern.permute.xlu0 %v1651_v3 }
  0x63   : > { %1262 = vperm.xlu1 %1612, %v1721_v1  }
  0x67   : > { %1613 = vset.pattern.permute.xlu1 %v1651_v3 }
  0x68   : > { %574 = vperm.xlu1 %1613, %v1772_v15  }
  0x6c   : > { %525 = vperm.xlu1 %1613, %v511_v27  }
  0x70   : > { %1614 = vset.pattern.permute.xlu1 %v1655_v23 }
  0x71   : > { %768 = vperm.xlu1 %1614, %v1745_v9  }
  0x75   : > { %1617 = vset.pattern.permute.xlu1 %v1654_v17 }
  0x76   : > { %849 = vperm.xlu1 %1617, %v1745_v9  }
  0x7a   : > { %853 = vperm.xlu1 %1617, %v1772_v15  }
  0x7e   : > { %1619 = vset.pattern.permute.xlu1 %v1656_v24 }
  0x7f   : > { %1023 = vperm.xlu1 %1619, %v1772_v15  }
  0x83   : > { %1620 = vset.pattern.permute.xlu1 %v1657_v25 }
  0x84   : > { %1100 = vperm.xlu1 %1620, %v1745_v9  }
  0x88   : > { %1622 = vset.pattern.permute.xlu1 %v1658_v26 }
  0x89   : > { %1274 = vperm.xlu1 %1622, %v1772_v15  }
  0x8d   : > { %1623 = vset.pattern.permute.xlu1 %v1651_v3 }
  0x8f   : > { %v1839_v28 = vpop.permute.xlu0 %606  ;;  %v302_v29 = vpop.permute.xlu1 %301 }
  0x95   : > { %v1841_v30 = vpop.permute.xlu0 %614 }
  0x96   : > { %v307_v31 = vpop.permute.xlu1 %306 }
  0x9a   : > { %v1843_v32 = vpop.permute.xlu0 %877 }
  0x9b   : > { %v1845_v33 = vpop.permute.xlu1 %610 }
  0x9e   : > { %v1847_v34 = vpop.permute.xlu0 %885 }
  0xa0   : > { %v1849_v35 = vpop.permute.xlu1 %873 }
  0xa3   : > { %v1851_v36 = vpop.permute.xlu0 %1136 }
  0xa5   : > { %v1853_v37 = vpop.permute.xlu1 %1124 }
  0xa8   : > { %v1859_v38 = vpop.permute.xlu0 %841 }
  0xa9   : > { %v1861_v39 = vpop.permute.xlu1 %1128 }
  0xad   : > { %v292_v40 = vpop.permute.xlu0 %291 }
  0xae   : > { %v1863_v41 = vpop.permute.xlu1 %618 }
  0xb1   : > { %v297_v53 = vpop.permute.xlu0 %296 }
  0xb3   : > { %v1865_v52 = vpop.permute.xlu1 %881 }
  0xb5   : > { %v1885_v5 = vpop.permute.xlu0 %515 }
  0xb8   : > { %v1867_v58 = vpop.permute.xlu1 %559 }
  0xb9   : > { %v1889_v7 = vpop.permute.xlu0 %569 }
  0xba   : > { %2749 = vst [vmem:[#allocation8_spill] sm:$0xff] %v1889_v7 }
  0xbc   : > { %v1869_v61 = vpop.permute.xlu1 %564 }
  0xbd   : > { %2744 = vst [vmem:[#allocation3_spill] sm:$0xff] %v1869_v61  ;;  %v1893_v9 = vpop.permute.xlu0 %530 }
  0xc0   : > { %v1871_v62 = vpop.permute.xlu1 %520 }
  0xc1   : > { %2745 = vst [vmem:[#allocation4_spill] sm:$0xff] %v1871_v62 }
  0xc2   : > { %v1897_v11 = vpop.permute.xlu0 %772 }
  0xc5   : > { %v1873_v63 = vpop.permute.xlu1 %1132 }
  0xc7   : > { %v1901_v13 = vpop.permute.xlu0 %1015 }
  0xc8   : > { %2752 = vst [vmem:[#allocation11_spill] sm:$0xff] %v1901_v13 }
  0xca   : > { %v1875_v0 = vpop.permute.xlu1 %760 }
  0xcb   : > { %v1905_v15 = vpop.permute.xlu0 %1019 }
  0xcc   : > { %2754 = vst [vmem:[#allocation13_spill] sm:$0xff] %v1905_v15 }
  0xce   : > { %v1877_v1 = vpop.permute.xlu1 %764 }
  0xcf   : > { %2746 = vst [vmem:[#allocation5_spill] sm:$0xff] %v1877_v1 }
  0xd0   : > { %v1909_v17 = vpop.permute.xlu0 %1092 }
  0xd3   : > { %v1879_v2 = vpop.permute.xlu1 %845 }
  0xd4   : > { %2747 = vst [vmem:[#allocation6_spill] sm:$0xff] %v1879_v2  ;;  %v1913_v19 = vpop.permute.xlu0 %1104 }
  0xd8   : > { %v1881_v3 = vpop.permute.xlu1 %1011 }
  0xd9   : > { %v1917_v21 = vpop.permute.xlu0 %1266 }
  0xda   : > { %2756 = vst [vmem:[#allocation15_spill] sm:$0xff] %v1917_v21 }
  0xdd   : > { %v1883_v4 = vpop.permute.xlu1 %1096  ;;  %v1921_v23 = vpop.permute.xlu0 %1270 }
  0xde   : > { %2748 = vst [vmem:[#allocation7_spill] sm:$0xff] %v1883_v4  ;;  %2758 = vst [vmem:[#allocation17_spill] sm:$0xff] %v1921_v23 }
  0xe2   : > { %v1887_v6 = vpop.permute.xlu1 %1262 }
  0xe7   : > { %v1891_v8 = vpop.permute.xlu1 %574 }
  0xe8   : > { %v388_v42 = vpop.f32.mrb[0].mxu0  ;;  %v406_v43 = vpop.f32.mrb[0].mxu1 }
  0xe9   : > { %v389_v44 = vadd.f32 %v388_v42, %v292_v40  ;;  %v390_v45 = vpop.f32.mrb[1].mxu0  ;;  %v408_v46 = vpop.f32.mrb[1].mxu1  ;;  %v407_v48 = vadd.f32 %v406_v43, %v307_v31 }
  0xea   : > { %v391_v47 = vadd.f32 %v390_v45, %v292_v40  ;;  %v409_v50 = vadd.f32 %v408_v46, %v307_v31 }
  0xeb   : > { %429 = vrot.lane.b32.xlu0 %v389_v44, %s1659_s19  ;;  %v1895_v10 = vpop.permute.xlu1 %525 }
  0xec   : > { %v394_v49 = vpop.f32.mrb[2].mxu0  ;;  %431 = vrot.lane.b32.xlu1 %v391_v47, %s1659_s19  ;;  %2750 = vst [vmem:[#allocation9_spill] sm:$0xff] %v1895_v10 }
  0xed   : > { %v396_v51 = vpop.f32.mrb[3].mxu0  ;;  %v395_v55 = vadd.f32 %v394_v49, %v297_v53 }
  0xee   : > { %v397_v57 = vadd.f32 %v396_v51, %v297_v53 }
  0xef   : > { %441 = vrot.lane.b32.xlu0 %v407_v48, %s1659_s19 }
  0xf0   : > { %v400_v54 = vpop.f32.mrb[4].mxu0  ;;  %443 = vrot.lane.b32.xlu1 %v409_v50, %s1659_s19  ;;  %v1899_v12 = vpop.permute.xlu1 %768 }
  0xf1   : > { %v402_v56 = vpop.f32.mrb[5].mxu0  ;;  %v401_v59 = vadd.f32 %v400_v54, %v302_v29  ;;  %2751 = vst [vmem:[#allocation10_spill] sm:$0xff] %v1899_v12 }
  0xf2   : > { %v403_v60 = vadd.f32 %v402_v56, %v302_v29 }
  0xf3   : > { %433 = vrot.lane.b32.xlu0 %v395_v55, %s1659_s19 }
  0xf4   : > { %435 = vrot.lane.b32.xlu1 %v397_v57, %s1659_s19 }
  0xf5   : > { %v1903_v14 = vpop.permute.xlu1 %849 }
  0xf6   : > { %2753 = vst [vmem:[#allocation12_spill] sm:$0xff] %v1903_v14 }
  0xf7   : > { %437 = vrot.lane.b32.xlu0 %v401_v59, %s1659_s19 }
  0xf8   : > { %439 = vrot.lane.b32.xlu1 %v403_v60, %s1659_s19 }
  0xf9   : > { %v1907_v16 = vpop.permute.xlu1 %853 }
  0xfe   : > { %v1911_v18 = vpop.permute.xlu1 %1023 }
 0x103   : > { %v1915_v20 = vpop.permute.xlu1 %1100 }
 0x104   : > { %2755 = vst [vmem:[#allocation14_spill] sm:$0xff] %v1915_v20 }
 0x108   : > { %v1919_v22 = vpop.permute.xlu1 %1274 }
 0x109   : > { %2757 = vst [vmem:[#allocation16_spill] sm:$0xff] %v1919_v22 }
 0x15d   : > { %v430_v24 = vpop.permute.xlu0 %429 }
 0x15e   : > { %462 = vst.msk [vmem:[#allocation2] sm:$0xff] %vm461_vm3, %v430_v24  ;;  %v432_v25 = vpop.permute.xlu1 %431 }
 0x15f   : > { %v1925_v26 = vsel %vm411_vm1, %v430_v24, %v432_v25  ;;  %464 = vst.msk [vmem:[#allocation2 + $0x10] sm:$0xff] %vm411_vm1, %v432_v25 }
 0x161   : > { %v442_v27 = vpop.permute.xlu0 %441 }
 0x162   : > { %471 = vst.msk [vmem:[#allocation2 + $0x48] sm:$0xff] %vm461_vm3, %v442_v27  ;;  %v444_v29 = vpop.permute.xlu1 %443 }
 0x163   : > { %v1930_v31 = vsel %vm411_vm1, %v442_v27, %v444_v29  ;;  %473 = vst.msk [vmem:[#allocation2 + $0x58] sm:$0xff] %vm411_vm1, %v444_v29  ;;  %v622_v27 = vmul.f32 %v1839_v28, %v1925_v26 }
 0x165   : > { %v434_v40 = vpop.permute.xlu0 %433  ;;  %v1933_v42 = vld [vmem:[#allocation2] sm:$0xff] }
 0x166   : > { %465 = vst.msk [vmem:[#allocation2 + $0x18] sm:$0xff] %vm461_vm3, %v434_v40  ;;  %v436_v43 = vpop.permute.xlu1 %435  ;;  %791 = vrot.lane.b32.xlu0 %v1933_v42, %s1660_s20  ;;  %710 = vrot.lane.b32.xlu1 %v1933_v42, %s1661_s21  ;;  %v595_v49 = vld [vmem:[#allocation2 + $0x10] sm:$0xff]  ;;  %v621_v51 = vmul.f32 %v1839_v28, %v1933_v42  ;;  %v1139_v53 = vmul.f32 %v1853_v37, %v1933_v42 }
 0x167   : > { %v1941_v44 = vsel %vm411_vm1, %v434_v40, %v436_v43  ;;  %467 = vst.msk [vmem:[#allocation2 + $0x28] sm:$0xff] %vm411_vm1, %v436_v43  ;;  %v888_v54 = vmul.f32 %v1849_v35, %v1933_v42  ;;  %v1141_v56 = vmul.f32 %v1853_v37, %v595_v49  ;;  %v623_v60 = vmul.f32 %v1839_v28, %v595_v49 }
 0x168   : > { %2759 = vst [vmem:[#allocation18_spill] sm:$0xff] %v1941_v44  ;;  %v890_v25 = vmul.f32 %v1849_v35, %v595_v49  ;;  %v889_v40 = vmul.f32 %v1849_v35, %v1925_v26  ;;  %v1140_v43 = vmul.f32 %v1853_v37, %v1925_v26  ;;  %v631_v28 = vmul.f32 %v1863_v41, %v1930_v31 }
 0x169   : > { %v438_v45 = vpop.permute.xlu0 %437  ;;  %v1954_v48 = vld [vmem:[#allocation2 + $0x48] sm:$0xff] }
 0x16a   : > { %468 = vst.msk [vmem:[#allocation2 + $0x30] sm:$0xff] %vm461_vm3, %v438_v45  ;;  %v440_v46 = vpop.permute.xlu1 %439  ;;  %1042 = vrot.lane.b32.xlu0 %v1933_v42, %s1662_s22  ;;  %961 = vrot.lane.b32.xlu1 %v1933_v42, %s1663_s23  ;;  %v1968_v50 = vld [vmem:[#allocation2 + $0x58] sm:$0xff]  ;;  %v630_v55 = vmul.f32 %v1863_v41, %v1954_v48  ;;  %v897_v57 = vmul.f32 %v1847_v34, %v1954_v48 }
 0x16b   : > { %v1950_v47 = vsel %vm411_vm1, %v438_v45, %v440_v46  ;;  %470 = vst.msk [vmem:[#allocation2 + $0x40] sm:$0xff] %vm411_vm1, %v440_v46  ;;  %v632_v59 = vmul.f32 %v1863_v41, %v1968_v50  ;;  %v899_v24 = vmul.f32 %v1847_v34, %v1968_v50  ;;  %v898_v45 = vmul.f32 %v1847_v34, %v1930_v31 }
 0x16c   : > { %469 = vst [vmem:[#allocation2 + $0x38] sm:$0xff] %v1950_v47  ;;  %v1150_v7 = vmul.f32 %v1851_v36, %v1968_v50 }
 0x16d   : > { %v2026_v29 = vld [vmem:[#allocation2 + $0x18] sm:$0xff] }
 0x16e   : > { %1212 = vrot.lane.b32.xlu0 %v1933_v42, %s1664_s26  ;;  %728 = vrot.lane.b32.xlu1 %v1954_v48, %s1661_s21  ;;  %2760 = vst [vmem:[#allocation19_spill] sm:$0xff] %v2026_v29  ;;  %v598_v35 = vld [vmem:[#allocation2 + $0x28] sm:$0xff]  ;;  %v624_v34 = vmul.f32 %v1845_v33, %v2026_v29 }
 0x16f   : > { %v626_v37 = vmul.f32 %v1845_v33, %v598_v35 }
 0x172   : > { %809 = vrot.lane.b32.xlu0 %v1954_v48, %s1660_s20  ;;  %979 = vrot.lane.b32.xlu1 %v1954_v48, %s1663_s23 }
 0x176   : > { %714 = vrot.lane.b32.xlu0 %v595_v49, %s1661_s21  ;;  %795 = vrot.lane.b32.xlu1 %v595_v49, %s1660_s20 }
 0x17a   : > { %965 = vrot.lane.b32.xlu0 %v595_v49, %s1663_s23  ;;  %1046 = vrot.lane.b32.xlu1 %v595_v49, %s1662_s22 }
 0x17e   : > { %813 = vrot.lane.b32.xlu0 %v1968_v50, %s1660_s20  ;;  %1216 = vrot.lane.b32.xlu1 %v595_v49, %s1664_s26  ;;  %v891_v49 = vmul.f32 %v1843_v32, %v2026_v29 }
 0x182   : > { %1064 = vrot.lane.b32.xlu0 %v1968_v50, %s1662_s22  ;;  %732 = vrot.lane.b32.xlu1 %v1968_v50, %s1661_s21 }
 0x186   : > { %793 = vrot.lane.b32.xlu0 %v1925_v26, %s1660_s20  ;;  %983 = vrot.lane.b32.xlu1 %v1968_v50, %s1663_s23 }
 0x18a   : > { %1044 = vrot.lane.b32.xlu0 %v1925_v26, %s1662_s22  ;;  %712 = vrot.lane.b32.xlu1 %v1925_v26, %s1661_s21 }
 0x18e   : > { %1214 = vrot.lane.b32.xlu0 %v1925_v26, %s1664_s26  ;;  %645 = vrot.lane.b32.xlu1 %v621_v51, %s1665_s27 }
 0x192   : > { %1163 = vrot.lane.b32.xlu0 %v1139_v53, %s1666_s28  ;;  %963 = vrot.lane.b32.xlu1 %v1925_v26, %s1663_s23 }
 0x196   : > { %912 = vrot.lane.b32.xlu1 %v888_v54, %s1667_s29  ;;  %730 = vrot.lane.b32.xlu0 %v1930_v31, %s1661_s21  ;;  %v893_v54 = vmul.f32 %v1843_v32, %v598_v35 }
 0x19a   : > { %811 = vrot.lane.b32.xlu1 %v1930_v31, %s1660_s20  ;;  %663 = vrot.lane.b32.xlu0 %v630_v55, %s1665_s27  ;;  %v1142_v55 = vmul.f32 %v1861_v39, %v2026_v29 }
 0x19e   : > { %1062 = vrot.lane.b32.xlu1 %v1930_v31, %s1662_s22  ;;  %981 = vrot.lane.b32.xlu0 %v1930_v31, %s1663_s23 }
 0x1a2   : > { %1167 = vrot.lane.b32.xlu1 %v1141_v56, %s1666_s28  ;;  %930 = vrot.lane.b32.xlu0 %v897_v57, %s1667_s29 }
 0x1a6   : > { %667 = vrot.lane.b32.xlu1 %v632_v59, %s1665_s27  ;;  %649 = vrot.lane.b32.xlu0 %v623_v60, %s1665_s27  ;;  %v1143_v59 = vmul.f32 %v1861_v39, %v1941_v44 }
 0x1aa   : > { %934 = vrot.lane.b32.xlu1 %v899_v24, %s1667_s29  ;;  %916 = vrot.lane.b32.xlu0 %v890_v25, %s1667_s29  ;;  %v1144_v25 = vmul.f32 %v1861_v39, %v598_v35  ;;  %v892_v39 = vmul.f32 %v1843_v32, %v1941_v44 }
 0x1ae   : > { %647 = vrot.lane.b32.xlu1 %v622_v27, %s1665_s27  ;;  %716 = vrot.lane.b32.xlu0 %v2026_v29, %s1661_s21 }
 0x1b2   : > { %797 = vrot.lane.b32.xlu1 %v2026_v29, %s1660_s20  ;;  %967 = vrot.lane.b32.xlu0 %v2026_v29, %s1663_s23 }
 0x1b6   : > { %914 = vrot.lane.b32.xlu1 %v889_v40, %s1667_s29  ;;  %1165 = vrot.lane.b32.xlu0 %v1140_v43, %s1666_s28  ;;  %v625_v43 = vmul.f32 %v1845_v33, %v1941_v44  ;;  %v1149_v33 = vmul.f32 %v1851_v36, %v1930_v31 }
 0x1ba   : > { %1048 = vrot.lane.b32.xlu1 %v2026_v29, %s1662_s22  ;;  %665 = vrot.lane.b32.xlu0 %v631_v28, %s1665_s27  ;;  %v2102_v28 = vld [vmem:[#allocation2 + $0x30] sm:$0xff] }
 0x1bb   : > { %v627_v12 = vmul.f32 %v1841_v30, %v2102_v28  ;;  %v894_v13 = vmul.f32 %v1865_v52, %v2102_v28 }
 0x1be   : > { %1218 = vrot.lane.b32.xlu1 %v2026_v29, %s1664_s26  ;;  %932 = vrot.lane.b32.xlu0 %v898_v45, %s1667_s29 }
 0x1c2   : > { %801 = vrot.lane.b32.xlu1 %v598_v35, %s1660_s20  ;;  %720 = vrot.lane.b32.xlu0 %v598_v35, %s1661_s21 }
 0x1c6   : > { %1052 = vrot.lane.b32.xlu1 %v598_v35, %s1662_s22  ;;  %971 = vrot.lane.b32.xlu0 %v598_v35, %s1663_s23 }
 0x1ca   : > { %1222 = vrot.lane.b32.xlu1 %v598_v35, %s1664_s26  ;;  %799 = vrot.lane.b32.xlu0 %v1941_v44, %s1660_s20 }
 0x1ce   : > { %1050 = vrot.lane.b32.xlu0 %v1941_v44, %s1662_s22  ;;  %718 = vrot.lane.b32.xlu1 %v1941_v44, %s1661_s21 }
 0x1d2   : > { %1220 = vrot.lane.b32.xlu0 %v1941_v44, %s1664_s26  ;;  %651 = vrot.lane.b32.xlu1 %v624_v34, %s1665_s27 }
 0x1d6   : > { %655 = vrot.lane.b32.xlu0 %v626_v37, %s1665_s27  ;;  %969 = vrot.lane.b32.xlu1 %v1941_v44, %s1663_s23 }
 0x1d8   : > { %v2071_v41 = vpop.permute.xlu1 %710  ;;  %v792_v46 = vpop.permute.xlu0 %791 }
 0x1da   : > { %1060 = vrot.lane.b32.xlu0 %v1954_v48, %s1662_s22  ;;  %918 = vrot.lane.b32.xlu1 %v891_v49, %s1667_s29  ;;  %v2114_v49 = vld [vmem:[#allocation2 + $0x40] sm:$0xff] }
 0x1dc   : > { %v2078_v51 = vpop.permute.xlu1 %961  ;;  %v1043_v53 = vpop.permute.xlu0 %1042 }
 0x1de   : > { %922 = vrot.lane.b32.xlu0 %v893_v54, %s1667_s29  ;;  %1169 = vrot.lane.b32.xlu1 %v1142_v55, %s1666_s28 }
 0x1e0   : > { %v2085_v56 = vpop.permute.xlu1 %728  ;;  %v1213_v57 = vpop.permute.xlu0 %1212 }
 0x1e2   : > { %1232 = vrot.lane.b32.xlu1 %v1930_v31, %s1664_s26  ;;  %1171 = vrot.lane.b32.xlu0 %v1143_v59, %s1666_s28 }
 0x1e4   : > { %v2092_v60 = vpop.permute.xlu1 %979  ;;  %v2094_v24 = vpop.permute.xlu0 %809 }
 0x1e6   : > { %1173 = vrot.lane.b32.xlu1 %v1144_v25, %s1666_s28  ;;  %1234 = vrot.lane.b32.xlu0 %v1968_v50, %s1664_s26 }
 0x1e8   : > { %v796_v27 = vpop.permute.xlu1 %795  ;;  %v715_v40 = vpop.permute.xlu0 %714 }
 0x1ea   : > { %653 = vrot.lane.b32.xlu1 %v625_v43, %s1665_s27  ;;  %722 = vrot.lane.b32.xlu0 %v2102_v28, %s1661_s21 }
 0x1ec   : > { %v1047_v45 = vpop.permute.xlu1 %1046  ;;  %v966_v34 = vpop.permute.xlu0 %965 }
 0x1ee   : > { %920 = vrot.lane.b32.xlu1 %v892_v39, %s1667_s29  ;;  %973 = vrot.lane.b32.xlu0 %v2102_v28, %s1663_s23 }
 0x1f0   : > { %v1217_v35 = vpop.permute.xlu1 %1216  ;;  %v814_v37 = vpop.permute.xlu0 %813 }
 0x1f2   : > { %1183 = vrot.lane.b32.xlu1 %v1149_v33, %s1666_s28  ;;  %807 = vrot.lane.b32.xlu0 %v2114_v49, %s1660_s20 }
 0x1f4   : > { %v733_v54 = vpop.permute.xlu1 %732  ;;  %v1065_v55 = vpop.permute.xlu0 %1064 }
 0x1f6   : > { %803 = vrot.lane.b32.xlu1 %v2102_v28, %s1660_s20  ;;  %1058 = vrot.lane.b32.xlu0 %v2114_v49, %s1662_s22 }
 0x1f8   : > { %v984_v32 = vpop.permute.xlu1 %983  ;;  %v794_v59 = vpop.permute.xlu0 %793 }
 0x1f9   : > { %v2124_v25 = vsel %vm815_vm4, %v792_v46, %v794_v59  ;;  %v2127_v43 = vsel %vm815_vm4, %v794_v59, %v796_v27 }
 0x1fa   : > { %1054 = vrot.lane.b32.xlu1 %v2102_v28, %s1662_s22  ;;  %1228 = vrot.lane.b32.xlu0 %v2114_v49, %s1664_s26 }
 0x1fc   : > { %v2133_v39 = vpop.permute.xlu1 %712  ;;  %v1045_v33 = vpop.permute.xlu0 %1044 }
 0x1fd   : > { %v2137_v23 = vsel %vm734_vm5, %v2133_v39, %v715_v40  ;;  %v2140_v46 = vsel %vm1066_vm6, %v1043_v53, %v1045_v33  ;;  %v2143_v27 = vsel %vm1066_vm6, %v1045_v33, %v1047_v45  ;;  %v1147_v40 = vmul.f32 %v1873_v63, %v2114_v49 }
 0x1fe   : > { %726 = vrot.lane.b32.xlu1 %v2114_v49, %s1661_s21  ;;  %724 = vrot.lane.b32.xlu0 %v1950_v47, %s1661_s21  ;;  %v474_v45 = vlaneseq }
 0x200   : > { %v2149_v59 = vpop.permute.xlu1 %645  ;;  %v1215_v20 = vpop.permute.xlu0 %1214 }
 0x201   : > { %v2154_v15 = vsel %vm1236_vm7, %v1213_v57, %v1215_v20  ;;  %v2157_v53 = vsel %vm1236_vm7, %v1215_v20, %v1217_v35  ;;  %v628_v57 = vmul.f32 %v1841_v30, %v1950_v47  ;;  %v475_v35 = vand.u32 127, %v474_v45 }
 0x202   : > { %977 = vrot.lane.b32.xlu1 %v2114_v49, %s1663_s23  ;;  %1179 = vrot.lane.b32.xlu0 %v1147_v40, %s1666_s28  ;;  %v895_v45 = vmul.f32 %v1865_v52, %v1950_v47 }
 0x203   : > { %v481_v2 = vand.u32 15, %v475_v35 }
 0x204   : > { %v2162_v33 = vpop.permute.xlu1 %963  ;;  %v2164_v14 = vpop.permute.xlu0 %1163 }
 0x205   : > { %v2172_v20 = vsel %vm985_vm8, %v2162_v33, %v966_v34  ;;  %vm2227_vm9 = vcmp.ge.s32.totalorder %v481_v2, 1  ;;  %vm2250_vm11 = vcmp.le.s32.totalorder %v481_v2, 14 }
 0x206   : > { %657 = vrot.lane.b32.xlu1 %v627_v12, %s1665_s27  ;;  %659 = vrot.lane.b32.xlu0 %v628_v57, %s1665_s27  ;;  %v476_v12 = vadd.s32 128, %v475_v35 }
 0x208   : > { %v2176_v40 = vpop.permute.xlu1 %912  ;;  %v2178_v10 = vpop.permute.xlu0 %730 }
 0x209   : > { %v2184_v22 = vsel %vm734_vm5, %v2178_v10, %v733_v54 }
 0x20a   : > { %805 = vrot.lane.b32.xlu1 %v1950_v47, %s1660_s20  ;;  %1185 = vrot.lane.b32.xlu0 %v1150_v7, %s1666_s28  ;;  %v488_v7 = vand.u32 15, %v476_v12 }
 0x20c   : > { %v812_v34 = vpop.permute.xlu1 %811  ;;  %v2189_v57 = vpop.permute.xlu0 %663  ;;  %vm2231_vm10 = vcmp.ge.s32.totalorder %v488_v7, 1  ;;  %vm2254_vm12 = vcmp.le.s32.totalorder %v488_v7, 14 }
 0x20d   : > { %v2195_v21 = vsel %vm815_vm4, %v2094_v24, %v812_v34  ;;  %v2198_v50 = vsel %vm815_vm4, %v812_v34, %v814_v37 }
 0x20e   : > { %975 = vrot.lane.b32.xlu1 %v1950_v47, %s1663_s23  ;;  %926 = vrot.lane.b32.xlu0 %v895_v45, %s1667_s29 }
 0x210   : > { %v2203_v54 = vpop.permute.xlu1 %1062  ;;  %v982_v4 = vpop.permute.xlu0 %981 }
 0x211   : > { %v2209_v24 = vsel %vm1066_vm6, %v2203_v54, %v1065_v55  ;;  %v2213_v37 = vsel %vm985_vm8, %v2092_v60, %v982_v4  ;;  %v2216_v34 = vsel %vm985_vm8, %v982_v4, %v984_v32  ;;  %v1148_v55 = vmul.f32 %v1851_v36, %v1954_v48 }
 0x212   : > { %924 = vrot.lane.b32.xlu1 %v894_v13, %s1667_s29  ;;  %1230 = vrot.lane.b32.xlu0 %v1954_v48, %s1664_s26  ;;  %v549_v36 = vsel %vm2227_vm9, %v1933_v42, 0.0  ;;  %v550_v32 = vsel %vm2231_vm10, %v1925_v26, 0.0  ;;  %v735_v42 = vsel %vm734_vm5, %v2071_v41, %v2133_v39  ;;  %v752_v41 = vsel %vm2254_vm12, %v2137_v23, 0.0 }
 0x213   : > { %v577_v1 = vmul.f32 %v1867_v58, %v549_v36  ;;  %v578_v62 = vmul.f32 %v1867_v58, %v550_v32  ;;  %v629_v36 = vmul.f32 %v1841_v30, %v2114_v49  ;;  %v556_v58 = vsel %vm2231_vm10, %v1930_v31, 0.0 }
 0x214   : > { %v2221_v12 = vpop.permute.xlu1 %1167  ;;  %v2223_v45 = vpop.permute.xlu0 %930  ;;  %v751_v2 = vsel %vm2250_vm11, %v735_v42, 0.0  ;;  %v896_v31 = vmul.f32 %v1865_v52, %v2114_v49  ;;  %v584_v42 = vmul.f32 %v1891_v8, %v556_v58  ;;  %v832_v23 = vsel %vm2227_vm9, %v2124_v25, 0.0 }
 0x215   : > { %v586_v39 = vadd.f32 %v578_v62, %v1885_v5  ;;  %v585_v7 = vadd.f32 %v577_v1, %v1885_v5  ;;  %v833_v62 = vsel %vm2231_vm10, %v2127_v43, 0.0  ;;  %v775_v52 = vmul.f32 %v1875_v0, %v751_v2 }
 0x216   : > { %1056 = vrot.lane.b32.xlu1 %v1950_v47, %s1662_s22  ;;  %1181 = vrot.lane.b32.xlu0 %v1148_v55, %s1666_s28  ;;  %v776_v49 = vmul.f32 %v1875_v0, %v752_v41  ;;  %v986_v25 = vsel %vm985_vm8, %v2078_v51, %v2162_v33  ;;  %v856_v43 = vmul.f32 %v1859_v38, %v832_v23 }
 0x217   : > { %v1146_v0 = vmul.f32 %v1873_v63, %v1950_v47  ;;  %v592_v41 = vadd.f32 %v584_v42, %v1893_v9  ;;  %v1002_v51 = vsel %vm2250_vm11, %v986_v25, 0.0 }
 0x218   : > { %v2238_v4 = vpop.permute.xlu1 %667  ;;  %v650_v13 = vpop.permute.xlu0 %649 }
 0x21a   : > { %1226 = vrot.lane.b32.xlu1 %v1950_v47, %s1664_s26 }
 0x21c   : > { %v2261_v26 = vpop.permute.xlu1 %934  ;;  %v917_v44 = vpop.permute.xlu0 %916 }
 0x21e   : > { %661 = vrot.lane.b32.xlu1 %v629_v36, %s1665_s27  ;;  %v555_v36 = vsel %vm2227_vm9, %v1954_v48, 0.0 }
 0x21f   : > { %v583_v58 = vmul.f32 %v1891_v8, %v555_v36  ;;  %v1003_v8 = vsel %vm2254_vm12, %v2172_v20, 0.0  ;;  %v1084_v20 = vsel %vm2231_vm10, %v2143_v27, 0.0 }
 0x220   : > { %v648_v32 = vpop.permute.xlu1 %647  ;;  %v2276_v30 = vpop.permute.xlu0 %716 }
 0x221   : > { %2769 = vst [vmem:[#allocation20_spill] sm:$0xff] %v2276_v30  ;;  %v670_v1 = vsel %vm669_vm13, %v2149_v59, %v648_v32  ;;  %v671_v5 = vsel %vm669_vm13, %v648_v32, %v650_v13  ;;  %v857_v59 = vmul.f32 %v1859_v38, %v833_v62  ;;  %v591_v47 = vadd.f32 %v583_v58, %v1893_v9 }
 0x222   : > { %v686_v48 = vadd.f32 %v670_v1, %v585_v7  ;;  %v687_v30 = vadd.f32 %v671_v5, %v586_v39  ;;  %928 = vrot.lane.b32.xlu1 %v896_v31, %s1667_s29  ;;  %v741_v39 = vsel %vm734_vm5, %v2085_v56, %v2178_v10  ;;  %v1145_v7 = vmul.f32 %v1873_v63, %v2102_v28 }
 0x223   : > { %v1254_v10 = vsel %vm2254_vm12, %v2157_v53, 0.0  ;;  %v1026_v63 = vmul.f32 %v1881_v3, %v1002_v51  ;;  %v1027_v31 = vmul.f32 %v1881_v3, %v1003_v8  ;;  %v757_v27 = vsel %vm2250_vm11, %v741_v39, 0.0 }
 0x224   : > { %v783_v29 = vadd.f32 %v775_v52, %v686_v48  ;;  %v784_v13 = vadd.f32 %v776_v49, %v687_v30  ;;  %v2302_v32 = vpop.permute.xlu1 %797  ;;  %v2304_v2 = vpop.permute.xlu0 %967  ;;  %v1083_v30 = vsel %vm2227_vm9, %v2140_v46, 0.0  ;;  %v1108_v3 = vmul.f32 %v1909_v17, %v1084_v20 }
 0x225   : > { %v1107_v23 = vmul.f32 %v1909_v17, %v1083_v30  ;;  %v781_v48 = vmul.f32 %v1897_v11, %v757_v27 }
 0x226   : > { %1224 = vrot.lane.b32.xlu1 %v2102_v28, %s1664_s26  ;;  %v864_v38 = vadd.f32 %v856_v43, %v783_v29  ;;  %v865_v33 = vadd.f32 %v857_v59, %v784_v13  ;;  %v1253_v29 = vsel %vm2250_vm11, %v2154_v15, 0.0  ;;  %v758_v15 = vsel %vm2254_vm12, %v2184_v22, 0.0 }
 0x227   : > { %v1277_v62 = vmul.f32 %v1887_v6, %v1253_v29  ;;  %v839_v22 = vsel %vm2231_vm10, %v2198_v50, 0.0  ;;  %v782_v17 = vmul.f32 %v1897_v11, %v758_v15 }
 0x228   : > { %v915_v9 = vpop.permute.xlu1 %914  ;;  %v1166_v56 = vpop.permute.xlu0 %1165  ;;  %v863_v13 = vmul.f32 %v1907_v16, %v839_v22 }
 0x229   : > { %v937_v46 = vsel %vm936_vm14, %v2176_v40, %v915_v9  ;;  %v938_v36 = vsel %vm936_vm14, %v915_v9, %v917_v44  ;;  %v1278_v40 = vmul.f32 %v1887_v6, %v1254_v10  ;;  %v838_v44 = vsel %vm2227_vm9, %v2195_v21, 0.0 }
 0x22a   : > { %v953_v42 = vadd.f32 %v937_v46, %v864_v38  ;;  %v954_v53 = vadd.f32 %v938_v36, %v865_v33  ;;  %1177 = vrot.lane.b32.xlu1 %v1146_v0, %s1666_s28  ;;  %v862_v50 = vmul.f32 %v1907_v16, %v838_v44  ;;  %v1188_v0 = vsel %vm1187_vm15, %v2164_v14, %v1166_v56 }
 0x22b   : > { %v1189_v11 = vsel %vm1187_vm15, %v1166_v56, %v2221_v12  ;;  %v1008_v16 = vsel %vm2250_vm11, %v2213_v37, 0.0  ;;  %v1009_v14 = vsel %vm2254_vm12, %v2216_v34, 0.0  ;;  %v1090_v37 = vsel %vm2231_vm10, %v2209_v24, 0.0 }
 0x22c   : > { %v1034_v1 = vadd.f32 %v1026_v63, %v953_v42  ;;  %v1035_v5 = vadd.f32 %v1027_v31, %v954_v53  ;;  %v2355_v52 = vpop.permute.xlu1 %1048  ;;  %v666_v49 = vpop.permute.xlu0 %665  ;;  %v1032_v34 = vmul.f32 %v1911_v18, %v1008_v16 }
 0x22d   : > { %v676_v6 = vsel %vm669_vm13, %v2189_v57, %v666_v49  ;;  %v677_v25 = vsel %vm669_vm13, %v666_v49, %v2238_v4  ;;  %v1406_v57 = vld [vmem:[%s2725_s6] sm:$0xff] }
 0x22e   : > { %v1115_v21 = vadd.f32 %v1107_v23, %v1034_v1  ;;  %v1116_v58 = vadd.f32 %v1108_v3, %v1035_v5  ;;  %v692_v43 = vadd.f32 %v676_v6, %v591_v47  ;;  %v693_v59 = vadd.f32 %v677_v25, %v592_v41  ;;  %1175 = vrot.lane.b32.xlu1 %v1145_v7, %s1666_s28 }
 0x230   : > { %v1204_v4 = vadd.f32 %v1188_v0, %v1115_v21  ;;  %v1205_v51 = vadd.f32 %v1189_v11, %v1116_v58  ;;  %v789_v8 = vadd.f32 %v781_v48, %v692_v43  ;;  %v790_v41 = vadd.f32 %v782_v17, %v693_v59  ;;  %v2373_v38 = vpop.permute.xlu1 %1218  ;;  %v933_v33 = vpop.permute.xlu0 %932 }
 0x231   : > { %v943_v12 = vsel %vm936_vm14, %v2223_v45, %v933_v33  ;;  %v944_v39 = vsel %vm936_vm14, %v933_v33, %v2261_v26  ;;  %v1033_v45 = vmul.f32 %v1911_v18, %v1009_v14  ;;  %v1114_v26 = vmul.f32 %v1913_v19, %v1090_v37  ;;  %v2773_v33 = vld [vmem:[#allocation3_spill] sm:$0xff] }
 0x232   : > { %v2385_v47 = vadd.f32 %v1277_v62, %v1204_v4  ;;  %v2387_v7 = vadd.f32 %v1278_v40, %v1205_v51  ;;  %v870_v30 = vadd.f32 %v862_v50, %v789_v8  ;;  %v871_v20 = vadd.f32 %v863_v13, %v790_v41  ;;  %1409 = vperm.xlu1 %1623, %v1406_v57   ;;  %v2770_v57 = vld [vmem:[#allocation19_spill] sm:$0xff]  ;;  %v2771_v4 = vld [vmem:[#allocation18_spill] sm:$0xff] }
 0x233   : > { %v552_v51 = vsel %vm2231_vm10, %v2771_v4, 0.0 }
 0x234   : > { %v802_v29 = vpop.permute.xlu1 %801  ;;  %v721_v10 = vpop.permute.xlu0 %720  ;;  %v959_v9 = vadd.f32 %v943_v12, %v870_v30  ;;  %v960_v56 = vadd.f32 %v944_v39, %v871_v20  ;;  %v2400_v24 = vmul.f32 0.70710677, %v2387_v7  ;;  %v2408_v40 = vmul.f32 0.70710677, %v2385_v47 }
 0x235   : > { %v580_v14 = vmul.f32 %v2773_v33, %v552_v51 }
 0x236   : > { %v1040_v63 = vadd.f32 %v1032_v34, %v959_v9  ;;  %v1041_v31 = vadd.f32 %v1033_v45, %v960_v56  ;;  %v2403_v18 = vand.u32 2147483647, %v2400_v24  ;;  %v2412_v5 = vand.u32 2147483647, %v2408_v40  ;;  %v2774_v45 = vld [vmem:[#allocation4_spill] sm:$0xff] }
 0x237   : > { %v588_v56 = vadd.f32 %v580_v14, %v2774_v45  ;;  %vm1382_vm0 = vcmp.ge.f32.partialorder %v2400_v24, 0.0  ;;  %vm1381_vm1 = vcmp.ge.f32.partialorder %v2408_v40, 0.0 }
 0x238   : > { %v1053_v46 = vpop.permute.xlu1 %1052  ;;  %v972_v36 = vpop.permute.xlu0 %971  ;;  %v2395_v27 = vadd.f32 %v1114_v26, %v1041_v31  ;;  %v1306_v44 = vmul.f32 0.3275911, %v2403_v18  ;;  %v1305_v25 = vmul.f32 0.3275911, %v2412_v5 }
 0x23a   : > { %v1310_v49 = vadd.f32 1.0, %v1306_v44  ;;  %v1309_v13 = vadd.f32 1.0, %v1305_v25 }
 0x23c   : > { %v2397_v15 = vpop.permute.xlu1 %1222  ;;  %v800_v42 = vpop.permute.xlu0 %799  ;;  %1625 = vrcp.f32 %v1310_v49 }
 0x23d   : > { %1627 = vrcp.f32 %v1309_v13  ;;  %v818_v30 = vsel %vm815_vm4, %v2302_v32, %v800_v42  ;;  %v819_v20 = vsel %vm815_vm4, %v800_v42, %v802_v29 }
 0x23e   : > { %v834_v26 = vsel %vm2227_vm9, %v818_v30, 0.0  ;;  %v835_v32 = vsel %vm2231_vm10, %v819_v20, 0.0 }
 0x240   : > { %v719_v53 = vpop.permute.xlu1 %718  ;;  %v1051_v23 = vpop.permute.xlu0 %1050 }
 0x241   : > { %v738_v41 = vsel %vm734_vm5, %v719_v53, %v721_v10  ;;  %v1069_v31 = vsel %vm1066_vm6, %v2355_v52, %v1051_v23  ;;  %v1070_v52 = vsel %vm1066_vm6, %v1051_v23, %v1053_v46 }
 0x242   : > { %v754_v10 = vsel %vm2254_vm12, %v738_v41, 0.0 }
 0x244   : > { %v652_v3 = vpop.permute.xlu1 %651  ;;  %v2405_v62 = vpop.permute.xlu0 %1220 }
 0x245   : > { %v1239_v41 = vsel %vm1236_vm7, %v2373_v38, %v2405_v62  ;;  %v1240_v14 = vsel %vm1236_vm7, %v2405_v62, %v2397_v15 }
 0x246   : > { %v2448_v34 = vpop.eup %1625 }
 0x248   : > { %v970_v22 = vpop.permute.xlu1 %969  ;;  %v656_v1 = vpop.permute.xlu0 %655 }
 0x249   : > { %v988_v25 = vsel %vm985_vm8, %v2304_v2, %v970_v22  ;;  %v1085_v2 = vsel %vm2227_vm9, %v1069_v31, 0.0  ;;  %v1255_v31 = vsel %vm2250_vm11, %v1239_v41, 0.0 }
 0x24c   : > { %v919_v48 = vpop.permute.xlu1 %918  ;;  %v1061_v17 = vpop.permute.xlu0 %1060 }
 0x24d   : > { %v1073_v6 = vsel %vm1066_vm6, %v1061_v17, %v2203_v54  ;;  %v551_v54 = vsel %vm2227_vm9, %v2770_v57, 0.0  ;;  %v2471_v57 = vpop.eup %1627 }
 0x24e   : > { %v1089_v21 = vsel %vm2227_vm9, %v1073_v6, 0.0  ;;  %v579_v16 = vmul.f32 %v2773_v33, %v551_v54  ;;  %v1322_v6 = vmul.f32 1.0614054, %v2448_v34  ;;  %v2776_v54 = vld [vmem:[#allocation6_spill] sm:$0xff] }
 0x24f   : > { %v1113_v58 = vmul.f32 %v1913_v19, %v1089_v21  ;;  %v2772_v19 = vld [vmem:[#allocation20_spill] sm:$0xff]  ;;  %v989_v21 = vsel %vm985_vm8, %v970_v22, %v972_v36  ;;  %v858_v4 = vmul.f32 %v2776_v54, %v834_v26  ;;  %v859_v51 = vmul.f32 %v2776_v54, %v835_v32  ;;  %v2779_v54 = vld [vmem:[#allocation15_spill] sm:$0xff] }
 0x250   : > { %v2420_v43 = vpop.permute.xlu1 %1169  ;;  %v923_v59 = vpop.permute.xlu0 %922  ;;  %v737_v8 = vsel %vm734_vm5, %v2772_v19, %v719_v53  ;;  %v587_v9 = vadd.f32 %v579_v16, %v2774_v45  ;;  %v1004_v36 = vsel %vm2250_vm11, %v988_v25, 0.0  ;;  %v1005_v46 = vsel %vm2254_vm12, %v989_v21, 0.0 }
 0x251   : > { %v2422_v50 = vadd.f32 %v1113_v58, %v1040_v63  ;;  %v753_v37 = vsel %vm2250_vm11, %v737_v8, 0.0  ;;  %v2775_v63 = vld [vmem:[#allocation5_spill] sm:$0xff]  ;;  %v1326_v23 = vadd.f32 -1.4531521, %v1322_v6  ;;  %v1086_v22 = vsel %vm2231_vm10, %v1070_v52, 0.0 }
 0x252   : > { %v777_v29 = vmul.f32 %v2775_v63, %v753_v37  ;;  %v778_v44 = vmul.f32 %v2775_v63, %v754_v10  ;;  %v1321_v37 = vmul.f32 1.0614054, %v2471_v57  ;;  %v2777_v10 = vld [vmem:[#allocation11_spill] sm:$0xff]  ;;  %v1358_v21 = vsub.f32 0.0, %v2403_v18 }
 0x253   : > { %v1028_v45 = vmul.f32 %v2777_v10, %v1004_v36  ;;  %v1330_v63 = vmul.f32 %v2448_v34, %v1326_v23 }
 0x254   : > { %v2424_v0 = vpop.permute.xlu1 %1232  ;;  %v2426_v11 = vpop.permute.xlu0 %1171  ;;  %v1362_v23 = vmul.f32 %v1358_v21, %v2403_v18 }
 0x255   : > { %v1334_v52 = vadd.f32 1.4214138, %v1330_v63 }
 0x256   : > { %v1367_v18 = vmul.f32 1.442695, %v1362_v23 }
 0x258   : > { %v2439_v12 = vpop.permute.xlu1 %1173  ;;  %v2441_v39 = vpop.permute.xlu0 %1234  ;;  %1629 = vpow2.f32 %v1367_v18 }
 0x25c   : > { %v654_v42 = vpop.permute.xlu1 %653  ;;  %v2461_v53 = vpop.permute.xlu0 %722 }
 0x25d   : > { %v672_v49 = vsel %vm669_vm13, %v652_v3, %v654_v42  ;;  %v673_v17 = vsel %vm669_vm13, %v654_v42, %v656_v1  ;;  %v1256_v42 = vsel %vm2254_vm12, %v1240_v14, 0.0 }
 0x25e   : > { %v688_v58 = vadd.f32 %v672_v49, %v587_v9  ;;  %v689_v13 = vadd.f32 %v673_v17, %v588_v56  ;;  %v1029_v9 = vmul.f32 %v2777_v10, %v1005_v46 }
 0x260   : > { %v785_v3 = vadd.f32 %v777_v29, %v688_v58  ;;  %v786_v19 = vadd.f32 %v778_v44, %v689_v13  ;;  %v921_v1 = vpop.permute.xlu1 %920  ;;  %v2475_v8 = vpop.permute.xlu0 %973  ;;  %v2778_v29 = vld [vmem:[#allocation7_spill] sm:$0xff]  ;;  %v1325_v44 = vadd.f32 -1.4531521, %v1321_v37  ;;  %v1190_v58 = vsel %vm1187_vm15, %v2420_v43, %v2426_v11 }
 0x261   : > { %v939_v30 = vsel %vm936_vm14, %v919_v48, %v921_v1  ;;  %v940_v20 = vsel %vm936_vm14, %v921_v1, %v923_v59  ;;  %v1109_v15 = vmul.f32 %v2778_v29, %v1085_v2  ;;  %v1110_v62 = vmul.f32 %v2778_v29, %v1086_v22 }
 0x262   : > { %v866_v33 = vadd.f32 %v858_v4, %v785_v3  ;;  %v867_v16 = vadd.f32 %v859_v51, %v786_v19  ;;  %v1191_v13 = vsel %vm1187_vm15, %v2426_v11, %v2439_v12  ;;  %v1279_v4 = vmul.f32 %v2779_v54, %v1255_v31 }
 0x263   : > { %v1280_v51 = vmul.f32 %v2779_v54, %v1256_v42  ;;  %v1329_v1 = vmul.f32 %v2471_v57, %v1325_v44  ;;  %v1338_v11 = vmul.f32 %v2448_v34, %v1334_v52  ;;  %v1244_v31 = vsel %vm1236_vm7, %v2424_v0, %v2441_v39 }
 0x264   : > { %v955_v56 = vadd.f32 %v939_v30, %v866_v33  ;;  %v956_v26 = vadd.f32 %v940_v20, %v867_v16  ;;  %v2496_v32 = vpop.permute.xlu1 %1183  ;;  %v2498_v38 = vpop.permute.xlu0 %807  ;;  %v1357_v33 = vsub.f32 0.0, %v2412_v5 }
 0x265   : > { %v1333_v41 = vadd.f32 1.4214138, %v1329_v1  ;;  %v1342_v37 = vadd.f32 -0.28449672, %v1338_v11 }
 0x266   : > { %v1036_v48 = vadd.f32 %v1028_v45, %v955_v56  ;;  %v1037_v59 = vadd.f32 %v1029_v9, %v956_v26  ;;  %v1361_v56 = vmul.f32 %v1357_v33, %v2412_v5 }
 0x267   : > { %v1337_v9 = vmul.f32 %v2471_v57, %v1333_v41 }
 0x268   : > { %v1117_v49 = vadd.f32 %v1109_v15, %v1036_v48  ;;  %v1118_v17 = vadd.f32 %v1110_v62, %v1037_v59  ;;  %v2507_v6 = vpop.permute.xlu1 %803  ;;  %v2509_v25 = vpop.permute.xlu0 %1058  ;;  %v1346_v62 = vmul.f32 %v2448_v34, %v1342_v37  ;;  %v1365_v59 = vmul.f32 1.442695, %v1361_v56 }
 0x269   : > { %v1341_v48 = vadd.f32 -0.28449672, %v1337_v9 }
 0x26a   : > { %v1206_v3 = vadd.f32 %v1190_v58, %v1117_v49  ;;  %v1207_v19 = vadd.f32 %v1191_v13, %v1118_v17  ;;  %v1350_v44 = vadd.f32 0.2548296, %v1346_v62  ;;  %v1260_v49 = vsel %vm2254_vm12, %v1244_v31, 0.0 }
 0x26b   : > { %v1345_v17 = vmul.f32 %v2471_v57, %v1341_v48 }
 0x26c   : > { %v2521_v2 = vadd.f32 %v1279_v4, %v1206_v3  ;;  %v2523_v36 = vadd.f32 %v1280_v51, %v1207_v19  ;;  %v2525_v46 = vpop.permute.xlu1 %1054  ;;  %v2527_v43 = vpop.permute.xlu0 %1228  ;;  %v1354_v39 = vmul.f32 %v2448_v34, %v1350_v44  ;;  %v2780_v4 = vld [vmem:[#allocation16_spill] sm:$0xff] }
 0x26d   : > { %v1284_v51 = vmul.f32 %v2780_v4, %v1260_v49  ;;  %v1630_v19 = vpop.eup %1629  ;;  %v1349_v1 = vadd.f32 0.2548296, %v1345_v17 }
 0x26e   : > { %v2532_v12 = vmul.f32 0.70710677, %v2521_v2  ;;  %v2535_v22 = vmul.f32 0.70710677, %v2523_v36  ;;  %v1374_v9 = vmul.f32 %v1630_v19, %v1354_v39 }
 0x270   : > { %v1303_v16 = vand.u32 2147483647, %v2532_v12  ;;  %v1304_v14 = vand.u32 2147483647, %v2535_v22  ;;  %v2540_v30 = vpop.permute.xlu1 %726  ;;  %v2542_v20 = vpop.permute.xlu0 %724  ;;  %v1378_v17 = vsub.f32 1.0, %v1374_v9  ;;  %vm1383_vm2 = vcmp.ge.f32.partialorder %v2532_v12, 0.0 }
 0x271   : > { %vm1384_vm3 = vcmp.ge.f32.partialorder %v2535_v22, 0.0 }
 0x272   : > { %v1307_v10 = vmul.f32 0.3275911, %v1303_v16  ;;  %v1308_v45 = vmul.f32 0.3275911, %v1304_v14  ;;  %v1359_v21 = vsub.f32 0.0, %v1303_v16  ;;  %v1360_v52 = vsub.f32 0.0, %v1304_v14 }
 0x274   : > { %v1311_v26 = vadd.f32 1.0, %v1307_v10  ;;  %v1312_v63 = vadd.f32 1.0, %v1308_v45  ;;  %v2546_v29 = vpop.permute.xlu1 %977  ;;  %v2548_v15 = vpop.permute.xlu0 %1179  ;;  %v1363_v11 = vmul.f32 %v1359_v21, %v1303_v16  ;;  %v1364_v10 = vmul.f32 %v1360_v52, %v1304_v14  ;;  %v542_v45 = vld [vmem:[#allocation2 + $0x38] sm:$0xff] }
 0x275   : > { %v553_v16 = vsel %vm2227_vm9, %v2102_v28, 0.0  ;;  %v554_v14 = vsel %vm2231_vm10, %v542_v45, 0.0 }
 0x276   : > { %1631 = vrcp.f32 %v1311_v26  ;;  %v1353_v26 = vmul.f32 %v2471_v57, %v1349_v1  ;;  %v1371_v31 = vmul.f32 1.442695, %v1364_v10  ;;  %v1386_v10 = vsub.f32 0.0, %v1378_v17 }
 0x277   : > { %1633 = vrcp.f32 %v1312_v63  ;;  %v1369_v63 = vmul.f32 1.442695, %v1363_v11 }
 0x278   : > { %v2554_v42 = vpop.permute.xlu1 %657  ;;  %v2556_v5 = vpop.permute.xlu0 %659  ;;  %1635 = vpow2.f32 %v1365_v59 }
 0x279   : > { %1637 = vpow2.f32 %v1369_v63 }
 0x27a   : > { %1639 = vpow2.f32 %v1371_v31  ;;  %v1390_v31 = vsel %vm1382_vm0, %v1378_v17, %v1386_v10 }
 0x27c   : > { %v806_v58 = vpop.permute.xlu1 %805  ;;  %v1186_v13 = vpop.permute.xlu0 %1185 }
 0x27d   : > { %v1195_v54 = vsel %vm1187_vm15, %v2496_v32, %v1186_v13 }
 0x27e   : > { %v1211_v3 = vadd.f32 %v1195_v54, %v2395_v27  ;;  %v2781_v54 = vld [vmem:[#allocation8_spill] sm:$0xff] }
 0x27f   : > { %v581_v39 = vmul.f32 %v2781_v54, %v553_v16 }
 0x280   : > { %v2566_v23 = vpop.eup %1631  ;;  %v2568_v41 = vadd.f32 %v1284_v51, %v1211_v3  ;;  %v2570_v33 = vpop.permute.xlu1 %975 }
 0x281   : > { %v2572_v18 = vpop.permute.xlu0 %926  ;;  %v2574_v37 = vpop.eup %1633  ;;  %v1323_v34 = vmul.f32 1.0614054, %v2566_v23  ;;  %v991_v10 = vsel %vm985_vm8, %v2570_v33, %v2546_v29 }
 0x282   : > { %v1324_v27 = vmul.f32 1.0614054, %v2574_v37  ;;  %v1636_v57 = vpop.eup %1635 }
 0x283   : > { %v1327_v56 = vadd.f32 -1.4531521, %v1323_v34  ;;  %v2592_v52 = vmul.f32 %v1636_v57, %v1353_v26 }
 0x284   : > { %v2582_v62 = vpop.permute.xlu1 %924  ;;  %v1328_v59 = vadd.f32 -1.4531521, %v1324_v27  ;;  %v739_v27 = vsel %vm734_vm5, %v2461_v53, %v2542_v20  ;;  %v2782_v53 = vld [vmem:[#allocation9_spill] sm:$0xff] }
 0x285   : > { %v1231_v48 = vpop.permute.xlu0 %1230  ;;  %v1331_v49 = vmul.f32 %v2566_v23, %v1327_v56  ;;  %v820_v56 = vsel %vm815_vm4, %v2507_v6, %v806_v58  ;;  %v1377_v63 = vsub.f32 1.0, %v2592_v52  ;;  %v821_v6 = vsel %vm815_vm4, %v806_v58, %v2498_v38 }
 0x286   : > { %v1243_v44 = vsel %vm1236_vm7, %v1231_v48, %v2424_v0  ;;  %v1332_v21 = vmul.f32 %v2574_v37, %v1328_v59  ;;  %v582_v0 = vmul.f32 %v2781_v54, %v554_v14  ;;  %v589_v14 = vadd.f32 %v581_v39, %v2782_v53  ;;  %v2784_v39 = vld [vmem:[#allocation12_spill] sm:$0xff] }
 0x287   : > { %v1259_v28 = vsel %vm2250_vm11, %v1243_v44, 0.0  ;;  %v1335_v13 = vadd.f32 1.4214138, %v1331_v49  ;;  %v837_v58 = vsel %vm2231_vm10, %v821_v6, 0.0  ;;  %v1385_v17 = vsub.f32 0.0, %v1377_v63 }
 0x288   : > { %v2595_v51 = vpop.permute.xlu1 %1056  ;;  %v1336_v19 = vadd.f32 1.4214138, %v1332_v21  ;;  %v1283_v34 = vmul.f32 %v2780_v4, %v1259_v28  ;;  %v590_v38 = vadd.f32 %v582_v0, %v2782_v53  ;;  %v2639_v28 = vadd.f32 1.0, %v1390_v31  ;;  %v1638_v0 = vpop.eup %1637 }
 0x289   : > { %v1182_v3 = vpop.permute.xlu0 %1181  ;;  %v1339_v1 = vmul.f32 %v2566_v23, %v1335_v13  ;;  %v2783_v13 = vld [vmem:[#allocation10_spill] sm:$0xff]  ;;  %v1072_v29 = vsel %vm1066_vm6, %v2595_v51, %v2509_v25  ;;  %v1389_v61 = vsel %vm1381_vm1, %v1377_v63, %v1385_v17  ;;  %v1293_v52 = vmul.f32 0.5, %v2385_v47  ;;  %v1405_v47 = vld [vmem:[%s2724_s5] sm:$0xff] }
 0x28a   : > { %v1194_v11 = vsel %vm1187_vm15, %v1182_v3, %v2496_v32  ;;  %v1340_v9 = vmul.f32 %v2574_v37, %v1336_v19  ;;  %v740_v32 = vsel %vm734_vm5, %v2542_v20, %v2540_v30  ;;  %v755_v30 = vsel %vm2250_vm11, %v739_v27, 0.0 }
 0x28b   : > { %v1210_v45 = vadd.f32 %v1194_v11, %v2422_v50  ;;  %v1343_v26 = vadd.f32 -0.28449672, %v1339_v1  ;;  %v674_v50 = vsel %vm669_vm13, %v2554_v42, %v2556_v5  ;;  %v836_v20 = vsel %vm2227_vm9, %v820_v56, 0.0 }
 0x28c   : > { %v2619_v16 = vpop.permute.xlu1 %1226  ;;  %v1344_v48 = vadd.f32 -0.28449672, %v1340_v9  ;;  %v756_v44 = vsel %vm2254_vm12, %v740_v32, 0.0  ;;  %v690_v49 = vadd.f32 %v674_v50, %v589_v14  ;;  %v779_v54 = vmul.f32 %v2783_v13, %v755_v30  ;;  %v1640_v9 = vpop.eup %1639 }
 0x28d   : > { %v2617_v4 = vadd.f32 %v1283_v34, %v1210_v45  ;;  %v1347_v59 = vmul.f32 %v2566_v23, %v1343_v26  ;;  %v860_v3 = vmul.f32 %v2784_v39, %v836_v20  ;;  %v780_v11 = vmul.f32 %v2783_v13, %v756_v44  ;;  %v2785_v20 = vld [vmem:[#allocation13_spill] sm:$0xff] }
 0x28e   : > { %v1348_v42 = vmul.f32 %v2574_v37, %v1344_v48  ;;  %v787_v27 = vadd.f32 %v779_v54, %v690_v49  ;;  %v861_v56 = vmul.f32 %v2784_v39, %v837_v58  ;;  %v1295_v26 = vmul.f32 0.5, %v2521_v2 }
 0x28f   : > { %v1351_v57 = vadd.f32 0.2548296, %v1347_v59  ;;  %v1007_v48 = vsel %vm2254_vm12, %v991_v10, 0.0  ;;  %v941_v2 = vsel %vm936_vm14, %v2582_v62, %v2572_v18  ;;  %v1088_v59 = vsel %vm2231_vm10, %v1072_v29, 0.0  ;;  %v2787_v10 = vld [vmem:[#allocation17_spill] sm:$0xff] }
 0x290   : > { %v662_v24 = vpop.permute.xlu1 %661  ;;  %v1352_v21 = vadd.f32 0.2548296, %v1348_v42  ;;  %v868_v53 = vadd.f32 %v860_v3, %v787_v27  ;;  %v1031_v42 = vmul.f32 %v2785_v20, %v1007_v48  ;;  %v1242_v62 = vsel %vm1236_vm7, %v2619_v16, %v2527_v43 }
 0x291   : > { %v1355_v19 = vmul.f32 %v2566_v23, %v1351_v57  ;;  %v675_v1 = vsel %vm669_vm13, %v2556_v5, %v662_v24  ;;  %v990_v5 = vsel %vm985_vm8, %v2475_v8, %v2570_v33  ;;  %v1071_v8 = vsel %vm1066_vm6, %v2525_v46, %v2595_v51 }
 0x292   : > { %v691_v34 = vadd.f32 %v675_v1, %v590_v38  ;;  %v1356_v45 = vmul.f32 %v2574_v37, %v1352_v21  ;;  %v1006_v6 = vsel %vm2250_vm11, %v990_v5, 0.0  ;;  %v957_v49 = vadd.f32 %v941_v2, %v868_v53  ;;  %v2786_v38 = vld [vmem:[#allocation14_spill] sm:$0xff] }
 0x293   : > { %v1375_v23 = vmul.f32 %v1638_v0, %v1355_v19  ;;  %v1087_v57 = vsel %vm2227_vm9, %v1071_v8, 0.0  ;;  %v1030_v13 = vmul.f32 %v2785_v20, %v1006_v6  ;;  %v1258_v43 = vsel %vm2254_vm12, %v1242_v62, 0.0 }
 0x294   : > { %v788_v32 = vadd.f32 %v780_v11, %v691_v34  ;;  %v929_v50 = vpop.permute.xlu1 %928  ;;  %v1376_v37 = vmul.f32 %v1640_v9, %v1356_v45  ;;  %v1296_v54 = vmul.f32 0.5, %v2523_v36  ;;  %v1111_v35 = vmul.f32 %v2786_v38, %v1087_v57 }
 0x295   : > { %v1379_v14 = vsub.f32 1.0, %v1375_v23  ;;  %v942_v30 = vsel %vm936_vm14, %v2572_v18, %v929_v50  ;;  %v1112_v18 = vmul.f32 %v2786_v38, %v1088_v59  ;;  %v1294_v1 = vmul.f32 0.5, %v2387_v7 }
 0x296   : > { %v869_v33 = vadd.f32 %v861_v56, %v788_v32  ;;  %v1380_v25 = vsub.f32 1.0, %v1376_v37  ;;  %v1038_v0 = vadd.f32 %v1030_v13, %v957_v49  ;;  %v1282_v34 = vmul.f32 %v2787_v10, %v1258_v43 }
 0x297   : > { %v1387_v31 = vsub.f32 0.0, %v1379_v14  ;;  %vm1412_vm4 = vcmask 130048  }
 0x298   : > { %v958_v44 = vadd.f32 %v942_v30, %v869_v33  ;;  %v1225_v46 = vpop.permute.xlu1 %1224  ;;  %v1388_v51 = vsub.f32 0.0, %v1380_v25  ;;  %v1119_v56 = vadd.f32 %v1111_v35, %v1038_v0 }
 0x299   : > { %v1391_v60 = vsel %vm1383_vm2, %v1379_v14, %v1387_v31  ;;  %v1241_v12 = vsel %vm1236_vm7, %v1225_v46, %v2619_v16 }
 0x29a   : > { %v1395_v58 = vadd.f32 1.0, %v1391_v60  ;;  %v1039_v24 = vadd.f32 %v1031_v42, %v958_v44  ;;  %v1392_v21 = vsel %vm1384_vm3, %v1380_v25, %v1388_v51  ;;  %v1257_v16 = vsel %vm2250_vm11, %v1241_v12, 0.0 }
 0x29b   : > { %v1396_v39 = vadd.f32 1.0, %v1392_v21  ;;  %v1281_v63 = vmul.f32 %v2787_v10, %v1257_v16 }
 0x29c   : > { %v1399_v3 = vmul.f32 %v1395_v58, %v1295_v26  ;;  %v1178_v22 = vpop.permute.xlu1 %1177  ;;  %v1120_v19 = vadd.f32 %v1112_v18, %v1039_v24  ;;  %v1393_v26 = vadd.f32 1.0, %v1389_v61 }
 0x29d   : > { %v1193_v11 = vsel %vm1187_vm15, %v1178_v22, %v2548_v15  ;;  %v1400_v9 = vmul.f32 %v1396_v39, %v1296_v54  ;;  %v1398_v15 = vmul.f32 %v2639_v28, %v1294_v1 }
 0x29e   : > { %v1403_v36 = vmul.f32 %v1399_v3, %v2617_v4  ;;  %v1209_v45 = vadd.f32 %v1193_v11, %v1120_v19  ;;  %v1397_v55 = vmul.f32 %v1393_v26, %v1293_v52 }
 0x29f   : > { %v1404_v23 = vmul.f32 %v1400_v9, %v2568_v41 }
 0x2a0   : > { %v1290_v27 = vadd.f32 %v1282_v34, %v1209_v45  ;;  %v1176_v7 = vpop.permute.xlu1 %1175 }
 0x2a1   : > { %v1192_v40 = vsel %vm1187_vm15, %v1176_v7, %v1178_v22 }
 0x2a2   : > { %v1208_v4 = vadd.f32 %v1192_v40, %v1119_v56  ;;  %v1402_v17 = vmul.f32 %v1398_v15, %v1290_v27 }
 0x2a4   : > { %v1289_v5 = vadd.f32 %v1281_v63, %v1208_v4  ;;  %v1562_v29 = vpack.c.bf16 %v1404_v23, %v1402_v17 }
 0x2a6   : > { %v1401_v32 = vmul.f32 %v1397_v55, %v1289_v5  ;;  %1563 = vmatprep.subr.bf16.mxu1 %v1562_v29 }
 0x2a8   : > { %v1564_v50 = vpack.c.bf16 %v1403_v36, %v1401_v32 }
 0x2aa   : > { %1565 = vmatpush1.bf16.msra.mxu1 %v1564_v50 }
 0x2ad   : > { %1557 = vmatmul.mubr.msk.f32.vlgmr.msra.gmra.mrb[2].mxu1 %vm1412_vm4, %v1405_v47 }
 0x2b1   : > { %v1410_v28 = vpop.permute.xlu1 %1409 }
 0x380   : > { %v1482_v37 = vpop.f32.mrb[2].mxu1 }
 0x381   : > { %v1483_v41 = vadd.f32 %v1482_v37, %v1410_v28  ;;  %v1484_v48 = vpop.f32.mrb[3].mxu1 }
 0x382   : > { %v1485_v53 = vadd.f32 %v1484_v48, %v1410_v28 }
 0x383   : > { %1487 = vst [vmem:[%s278_s14] sm:$0xff] %v1483_v41 }
 0x384   : > { %1488 = vst [vmem:[%s278_s14 + $0x8] sm:$0xff] %v1485_v53 }
 0x385 PF: > { %s17_s24 = sadd.s32 1, %s1647_s24  }
 0x386   : > { %p14_p4 = scmp.ge.s32.totalorder %s17_s24, 4  }
 0x388   :  { %16 = sbr.rel (!%p14_p4) target bundleno = 1 (0x1), region = 78 }

</bundles_post_ra>
